<compile_context>
chip_gen: v7x
topology: tpu7x:2x2x1
jax: 0.10.0
libtpu: 0.0.40
codegen_flags: <defaults>
</compile_context>

<pallas_src>
import functools

import numpy as np
import jax
import jax.numpy as jnp
from jax.experimental import pallas as pl
from jax.experimental.pallas import tpu as pltpu


def _round_up(x, m):
    return -(-x // m) * m


# --------------------------------------------------------------------------- #
# Fused kernel: W_i -> (depth-1) message-passing steps -> W_o -> block-diagonal
# attention readout -> masked segment mean.
# --------------------------------------------------------------------------- #
def fhgnn_encoder_kernel(f_bonds_ref, f_atoms_ref, a2b_ref, b2a_ref,
                         w_i_ref, w_h_ref, w_o_atom_ref, w_o_msg_ref, b_o_ref,
                         w_a_ref, w_b_ref, b_b_ref,
                         seg_row_ref, seg_col_ref, mol_ind_ref, sizes_ref,
                         out_ref, *, depth):
    f32 = jnp.float32
    bf16 = jnp.bfloat16

    # ---- W_i + ReLU (initial bond messages) --------------------------------
    inputs = jnp.dot(f_bonds_ref[...], w_i_ref[...], preferred_element_type=f32)
    message = jnp.maximum(inputs, 0.0)                        # (NBp, Hp) f32
    inputs_bf = inputs.astype(bf16)                           # persistent residual in bf16

    a2b_mat = a2b_ref[...]                                    # (NAp, NBp) bf16 counts
    b2a_mat = b2a_ref[...]                                    # (NBp, NAp) bf16 one-hot
    w_h = w_h_ref[...]                                        # (Hp, Hp)  bf16

    nb = message.shape[0]
    row = jax.lax.broadcasted_iota(jnp.int32, (nb, 1), 0)
    is_even = (row & 1) == 0                                  # (NBp, 1)

    # ---- depth-1 message-passing steps (dropout = identity, eval mode) -----
    # Small fixed depth -> static unroll.
    for _ in range(depth - 1):
        # index_select_ND(message, a2b).sum(1)  ==  a2b_mat @ message
        a_message = jnp.dot(a2b_mat, message.astype(bf16),
                            preferred_element_type=f32)       # (NAp, Hp)
        # a_message[b2a]  ==  b2a_mat @ a_message
        gathered = jnp.dot(b2a_mat, a_message.astype(bf16),
                           preferred_element_type=f32)        # (NBp, Hp)
        # message[b2revb]: reverse bonds sit at adjacent rows (2k, 2k+1), so the
        # gather is a pairwise row swap: XLU sublane rotates + parity select.
        up = pltpu.roll(message, shift=nb - 1, axis=0)        # row i+1 (shift -1 mod nb)
        down = pltpu.roll(message, shift=1, axis=0)           # row i-1
        rev_message = jnp.where(is_even, up, down)
        msg = jnp.dot((gathered - rev_message).astype(bf16), w_h,
                      preferred_element_type=f32)             # W_h (no bias)
        message = jnp.maximum(inputs_bf.astype(f32) + msg, 0.0)   # ReLU

    # ---- final aggregation + W_o + ReLU -------------------------------------
    a_message = jnp.dot(a2b_mat, message.astype(bf16), preferred_element_type=f32)
    # W_o(concat([f_atoms, a_message], 1)) as a split matmul.
    pre = (jnp.dot(f_atoms_ref[...], w_o_atom_ref[...], preferred_element_type=f32)
           + jnp.dot(a_message.astype(bf16), w_o_msg_ref[...],
                     preferred_element_type=f32)
           + b_o_ref[...])
    ah = jnp.maximum(pre, 0.0)                                # (NAp, Hp) atom_hiddens

    # ---- single-pass block-diagonal attention readout ------------------------
    ah_b = ah.astype(bf16)
    ah_t = ah_b.T                                             # (Hp, NAp), one explicit transpose
    q = jnp.dot(ah_b, w_a_ref[...], preferred_element_type=f32)          # (NAp, Hp)
    # scores[i, j] = <W_a(ah)_i, ah_j>  (canonical MXU contraction via ah_t)
    scores = jnp.dot(q.astype(bf16), ah_t, preferred_element_type=f32)   # (NAp, NAp)
    # Padded atoms carry seg == -1 and so match each other: no row is ever
    # fully masked.
    same_mol = seg_row_ref[...] == seg_col_ref[...]                      # (NAp, NAp)
    scores = jnp.where(same_mol, scores, jnp.float32(-1e30))
    m = jnp.max(scores, axis=1, keepdims=True)
    e = jnp.exp(scores - m)                                   # masked cols underflow to 0
    att_w = e * pl.reciprocal(jnp.sum(e, axis=1, keepdims=True), approx=True)
    att_h = jnp.dot(att_w.astype(bf16), ah_b, preferred_element_type=f32)
    att_h = jnp.maximum(
        jnp.dot(att_h.astype(bf16), w_b_ref[...], preferred_element_type=f32)
        + b_b_ref[...], 0.0)                                  # ReLU (+ dropout = id)

    contrib = (ah + att_h).astype(bf16)                       # (NAp, Hp)
    # masked segment mean: (Mp, NAp) bf16 indicator @ contrib, exact divide
    seg_sum = jnp.dot(mol_ind_ref[...], contrib, preferred_element_type=f32)
    denom = jnp.maximum(sizes_ref[...], 1.0)                  # size==0 -> zero vector
    out_ref[...] = seg_sum / denom


# --------------------------------------------------------------------------- #
# Wrapper: host-side index bookkeeping + lane/sublane padding + bf16 casts +
# one pallas_call.
# --------------------------------------------------------------------------- #
def hgnn_encoder_forward(f_atoms, f_bonds, a2b, b2a, b2revb, a_scope, params, depth):
    """Assumes chemprop BatchMolGraph conventions: row 0 of f_atoms/f_bonds is
    zero padding, a2b pads with bond index 0, and b2revb is a fixed-point-free
    involution on bonds >= 1 (each directed bond has a distinct reverse)."""
    f_atoms_np = np.asarray(f_atoms, np.float32)
    f_bonds_np = np.asarray(f_bonds, np.float32)
    a2b_np = np.asarray(a2b)
    b2a_np = np.asarray(b2a)
    b2revb_np = np.asarray(b2revb)

    NA, atom_fdim = f_atoms_np.shape
    NB, bond_fdim = f_bonds_np.shape
    H = params["W_i"].shape[1]
    num_mols = len(a_scope)

    # -- lane-dense / packing-friendly padded extents ---------------------------
    Hp = _round_up(H, 128)                 # hidden dim -> 128-lane multiple
    Fa = _round_up(atom_fdim, 128)
    Fb = _round_up(bond_fdim, 128)
    NAp = _round_up(NA, 16)                # bf16 packs 16 rows / sublane tile
    Mp = _round_up(max(num_mols, 1), 16)

    # -- reorder bonds so every reverse pair occupies rows (2k, 2k+1) ----------
    order = [0, -1]                        # new row -> old bond index (-1 = zero pad)
    placed = np.zeros(NB, dtype=bool)
    placed[0] = True
    for i in range(1, NB):
        if placed[i]:
            continue
        j = int(b2revb_np[i])
        order.append(i)
        placed[i] = True
        if j <= 0 or j == i or placed[j]:
            order.append(-1)               # degenerate (never produced by chemprop)
        else:
            order.append(j)
            placed[j] = True
    while len(order) % 16:                 # even count keeps pairs aligned
        order.append(-1)
    order = np.asarray(order, dtype=np.int64)
    NBp = order.shape[0]
    valid = order >= 0
    new_pos = np.zeros(NB, dtype=np.int64)
    new_pos[order[valid]] = np.nonzero(valid)[0]

    old_for_pos = np.where(valid, order, NB)          # index NB -> synthetic zero bond
    fb_ext = np.concatenate([f_bonds_np, np.zeros((1, bond_fdim), np.float32)], 0)
    f_bonds_p = np.zeros((NBp, Fb), np.float32)
    f_bonds_p[:, :bond_fdim] = fb_ext[old_for_pos]
    f_atoms_p = np.zeros((NAp, Fa), np.float32)
    f_atoms_p[:NA, :atom_fdim] = f_atoms_np

    # -- gather matrices (small exact integers -> bf16 is lossless) ------------
    a2b_new = new_pos[a2b_np]                          # (NA, max_nb) new bond rows
    a2b_mat = np.zeros((NAp, NBp), np.float32)
    np.add.at(a2b_mat,
              (np.repeat(np.arange(NA), a2b_new.shape[1]), a2b_new.reshape(-1)),
              1.0)
    b2a_ext = np.concatenate([b2a_np.astype(np.int64), np.zeros((1,), np.int64)])
    b2a_new = b2a_ext[old_for_pos]
    b2a_mat = np.zeros((NBp, NAp), np.float32)
    b2a_mat[np.arange(NBp), b2a_new] = 1.0

    # -- per-atom segment ids, molecule indicator & sizes ----------------------
    seg = np.full((NAp,), -1, np.int32)
    mol_ind = np.zeros((Mp, NAp), np.float32)
    sizes = np.zeros((Mp, 1), np.float32)
    for mi, (st, sz) in enumerate(a_scope):
        seg[st:st + sz] = mi
        mol_ind[mi, st:st + sz] = 1.0
        sizes[mi, 0] = float(sz)

    def pad2(w, rows, cols):
        w = np.asarray(w, np.float32)
        out = np.zeros((rows, cols), np.float32)
        out[:w.shape[0], :w.shape[1]] = w
        return out

    bf16 = jnp.bfloat16
    args = (
        jnp.asarray(f_bonds_p, bf16), jnp.asarray(f_atoms_p, bf16),
        jnp.asarray(a2b_mat, bf16), jnp.asarray(b2a_mat, bf16),
        jnp.asarray(pad2(params["W_i"], Fb, Hp), bf16),
        jnp.asarray(pad2(params["W_h"], Hp, Hp), bf16),
        jnp.asarray(pad2(params["W_o_atom"], Fa, Hp), bf16),
        jnp.asarray(pad2(params["W_o_msg"], Hp, Hp), bf16),
        jnp.asarray(pad2(params["b_o"], 1, Hp), jnp.float32),
        jnp.asarray(pad2(params["W_a"], Hp, Hp), bf16),
        jnp.asarray(pad2(params["W_b"], Hp, Hp), bf16),
        jnp.asarray(pad2(params["b_b"], 1, Hp), jnp.float32),
        jnp.asarray(seg.reshape(NAp, 1)), jnp.asarray(seg.reshape(1, NAp)),
        jnp.asarray(mol_ind, bf16), jnp.asarray(sizes, jnp.float32),
    )

    # -- size the VMEM budget from the actual chip (v7x 64 MiB vs v5e/v6e 128) --
    vmem_limit = 64 * 1024 * 1024
    try:
        cap = getattr(pltpu.get_tpu_info(), "vmem_capacity_bytes", None)
        if cap:
            vmem_limit = min((int(cap) * 3) // 4, 112 * 1024 * 1024)
    except Exception:
        pass

    out = pl.pallas_call(
        functools.partial(fhgnn_encoder_kernel, depth=depth),
        out_shape=jax.ShapeDtypeStruct((Mp, Hp), jnp.float32),
        compiler_params=pltpu.CompilerParams(vmem_limit_bytes=vmem_limit),
    )(*args)
    return out[:num_mols, :H]


# --------------------------------------------------------------------------- #
# Pure-JAX reference (mirrors the PyTorch forward, eval mode)
# --------------------------------------------------------------------------- #
def reference_forward(f_atoms, f_bonds, a2b, b2a, b2revb, a_scope, p, depth):
    inputs = f_bonds @ p["W_i"]
    message = jnp.maximum(inputs, 0.0)
    for _ in range(depth - 1):
        a_msg = message[a2b].sum(axis=1)
        message = a_msg[b2a] - message[b2revb]
        message = message @ p["W_h"]
        message = jnp.maximum(inputs + message, 0.0)
    a_msg = message[a2b].sum(axis=1)
    a_input = jnp.concatenate([f_atoms, a_msg], axis=1)
    W_o = jnp.concatenate([p["W_o_atom"], p["W_o_msg"]], axis=0)
    ah = jnp.maximum(a_input @ W_o + p["b_o"], 0.0)
    vecs = []
    for (st, sz) in a_scope:
        cur = ah[st:st + sz]
        att_w = jax.nn.softmax((cur @ p["W_a"]) @ cur.T, axis=1)
        att_h = jnp.maximum((att_w @ cur) @ p["W_b"] + p["b_b"], 0.0)
        vecs.append(jnp.sum(cur + att_h, axis=0) / sz)
    return jnp.stack(vecs, axis=0)


# --------------------------------------------------------------------------- #
# Main
# --------------------------------------------------------------------------- #
if __name__ == "__main__":
    atom_fdim, bond_fdim, hidden_size, depth = 16, 24, 32, 3

    # ---- small synthetic BatchMolGraph (chemprop conventions: row 0 of
    #      atoms/bonds is zero padding; a2b pads with bond index 0).
    mol_sizes = [8, 8, 8, 7]
    max_nb = 4
    NA = 1 + sum(mol_sizes)
    a2b = [[0] * max_nb for _ in range(NA)]
    a2b_count = [0] * NA
    b2a = [0]
    b2revb = [0]
    a_scope = []
    a_ptr = 1
    for sz in mol_sizes:
        a_scope.append((a_ptr, sz))
        for k in range(sz - 1):          # chain graph per molecule
            u, v = a_ptr + k, a_ptr + k + 1
            b1 = len(b2a); b2a.append(u)
            b2 = len(b2a); b2a.append(v)
            b2revb.append(b2); b2revb.append(b1)
            a2b[v][a2b_count[v]] = b1; a2b_count[v] += 1
            a2b[u][a2b_count[u]] = b2; a2b_count[u] += 1
        a_ptr += sz
    NB = len(b2a)

    a2b = jnp.asarray(np.array(a2b, dtype=np.int32))
    b2a = jnp.asarray(np.array(b2a, dtype=np.int32))
    b2revb = jnp.asarray(np.array(b2revb, dtype=np.int32))

    # ---- deterministic features & parameters
    key = jax.random.PRNGKey(0)
    ks = jax.random.split(key, 10)
    f_atoms = jax.random.normal(ks[0], (NA, atom_fdim), jnp.float32)
    f_atoms = f_atoms.at[0].set(0.0)
    f_bonds = jax.random.normal(ks[1], (NB, bond_fdim), jnp.float32)
    f_bonds = f_bonds.at[0].set(0.0)

    def lin_w(k, fan_in, fan_out):
        bound = 1.0 / np.sqrt(fan_in)
        return jax.random.uniform(k, (fan_in, fan_out), jnp.float32, -bound, bound)

    W_o_full = lin_w(ks[4], atom_fdim + hidden_size, hidden_size)
    params = {
        "W_i": lin_w(ks[2], bond_fdim, hidden_size),
        "W_h": lin_w(ks[3], hidden_size, hidden_size),
        "W_o_atom": W_o_full[:atom_fdim],
        "W_o_msg": W_o_full[atom_fdim:],
        "b_o": jax.random.uniform(ks[5], (1, hidden_size), jnp.float32,
                                  -1.0 / np.sqrt(atom_fdim + hidden_size),
                                  1.0 / np.sqrt(atom_fdim + hidden_size)),
        "W_a": lin_w(ks[6], hidden_size, hidden_size),
        "W_b": lin_w(ks[7], hidden_size, hidden_size),
        "b_b": jax.random.uniform(ks[8], (1, hidden_size), jnp.float32,
                                  -1.0 / np.sqrt(hidden_size),
                                  1.0 / np.sqrt(hidden_size)),
    }

    out = hgnn_encoder_forward(f_atoms, f_bonds, a2b, b2a, b2revb,
                               a_scope, params, depth)
    out = jax.block_until_ready(out)

    ref = jax.block_until_ready(
        reference_forward(f_atoms, f_bonds, a2b, b2a, b2revb, a_scope, params, depth))

    np.testing.assert_allclose(np.asarray(out), np.asarray(ref),
                               rtol=5e-2, atol=5e-2)
    print("KERNEL_OK")
</pallas_src>

<mosaic_0001>
module attributes {stable_mosaic.version = 11 : i64} {
  func.func @fhgnn_encoder_kernel(%arg0: memref<64x128xbf16, #tpu.memory_space<vmem>>, %arg1: memref<32x128xbf16, #tpu.memory_space<vmem>>, %arg2: memref<32x64xbf16, #tpu.memory_space<vmem>>, %arg3: memref<64x32xbf16, #tpu.memory_space<vmem>>, %arg4: memref<128x128xbf16, #tpu.memory_space<vmem>>, %arg5: memref<128x128xbf16, #tpu.memory_space<vmem>>, %arg6: memref<128x128xbf16, #tpu.memory_space<vmem>>, %arg7: memref<128x128xbf16, #tpu.memory_space<vmem>>, %arg8: memref<1x128xf32, #tpu.memory_space<vmem>>, %arg9: memref<128x128xbf16, #tpu.memory_space<vmem>>, %arg10: memref<128x128xbf16, #tpu.memory_space<vmem>>, %arg11: memref<1x128xf32, #tpu.memory_space<vmem>>, %arg12: memref<32x1xi32, #tpu.memory_space<vmem>>, %arg13: memref<1x32xi32, #tpu.memory_space<vmem>>, %arg14: memref<16x32xbf16, #tpu.memory_space<vmem>>, %arg15: memref<16x1xf32, #tpu.memory_space<vmem>>, %arg16: memref<16x128xf32, #tpu.memory_space<vmem>>) attributes {dimension_semantics = [], scalar_prefetch = 0 : i64, scratch_operands = 0 : i64, tpu.core_type = #tpu.core_type<tc>} {
    %c0 = arith.constant 0 : index
    %c0_0 = arith.constant 0 : index
    %0 = vector.load %arg0[%c0, %c0_0] : memref<64x128xbf16, #tpu.memory_space<vmem>>, vector<64x128xbf16>
    %c0_1 = arith.constant 0 : index
    %c0_2 = arith.constant 0 : index
    %1 = vector.load %arg4[%c0_1, %c0_2] : memref<128x128xbf16, #tpu.memory_space<vmem>>, vector<128x128xbf16>
    %cst = arith.constant dense<0.000000e+00> : vector<64x128xf32>
    %2 = tpu.matmul %0, %1, %cst {dimension_numbers = #tpu.dot_dimension_numbers<[1], [0], [0], [1], [0, 0, 1, 1], [], []>} : vector<64x128xbf16>, vector<128x128xbf16>, vector<64x128xf32> -> vector<64x128xf32>
    %cst_3 = arith.constant 0.000000e+00 : f32
    %3 = vector.broadcast %cst_3 : f32 to vector<64x128xf32>
    %4 = arith.maximumf %2, %3 : vector<64x128xf32>
    %5 = arith.truncf %2 : vector<64x128xf32> to vector<64x128xbf16>
    %c0_4 = arith.constant 0 : index
    %c0_5 = arith.constant 0 : index
    %6 = vector.load %arg2[%c0_4, %c0_5] : memref<32x64xbf16, #tpu.memory_space<vmem>>, vector<32x64xbf16>
    %c0_6 = arith.constant 0 : index
    %c0_7 = arith.constant 0 : index
    %7 = vector.load %arg3[%c0_6, %c0_7] : memref<64x32xbf16, #tpu.memory_space<vmem>>, vector<64x32xbf16>
    %c0_8 = arith.constant 0 : index
    %c0_9 = arith.constant 0 : index
    %8 = vector.load %arg5[%c0_8, %c0_9] : memref<128x128xbf16, #tpu.memory_space<vmem>>, vector<128x128xbf16>
    %9 = tpu.iota {dimensions = array<i32: 0>} : vector<64x1xi32>
    %c1_i32 = arith.constant 1 : i32
    %10 = vector.broadcast %c1_i32 : i32 to vector<64x1xi32>
    %11 = arith.andi %9, %10 : vector<64x1xi32>
    %c0_i32 = arith.constant 0 : i32
    %12 = vector.broadcast %c0_i32 : i32 to vector<64x1xi32>
    %13 = arith.cmpi eq, %11, %12 : vector<64x1xi32>
    %14 = arith.truncf %4 : vector<64x128xf32> to vector<64x128xbf16>
    %cst_10 = arith.constant dense<0.000000e+00> : vector<32x128xf32>
    %15 = tpu.matmul %6, %14, %cst_10 {dimension_numbers = #tpu.dot_dimension_numbers<[1], [0], [0], [1], [0, 0, 1, 1], [], []>} : vector<32x64xbf16>, vector<64x128xbf16>, vector<32x128xf32> -> vector<32x128xf32>
    %16 = arith.truncf %15 : vector<32x128xf32> to vector<32x128xbf16>
    %cst_11 = arith.constant dense<0.000000e+00> : vector<64x128xf32>
    %17 = tpu.matmul %7, %16, %cst_11 {dimension_numbers = #tpu.dot_dimension_numbers<[1], [0], [0], [1], [0, 0, 1, 1], [], []>} : vector<64x32xbf16>, vector<32x128xbf16>, vector<64x128xf32> -> vector<64x128xf32>
    %c63_i32 = arith.constant 63 : i32
    %18 = tpu.dynamic_rotate %4 by %c63_i32 dim 0 : vector<64x128xf32>, i32 -> vector<64x128xf32>
    %c1_i32_12 = arith.constant 1 : i32
    %19 = tpu.dynamic_rotate %4 by %c1_i32_12 dim 0 : vector<64x128xf32>, i32 -> vector<64x128xf32>
    %20 = vector.shape_cast %13 : vector<64x1xi1> to vector<64x1xi1>
    %21 = vector.broadcast %20 : vector<64x1xi1> to vector<64x128xi1>
    %22 = arith.select %21, %18, %19 : vector<64x128xi1>, vector<64x128xf32>
    %23 = arith.subf %17, %22 : vector<64x128xf32>
    %24 = arith.truncf %23 : vector<64x128xf32> to vector<64x128xbf16>
    %cst_13 = arith.constant dense<0.000000e+00> : vector<64x128xf32>
    %25 = tpu.matmul %24, %8, %cst_13 {dimension_numbers = #tpu.dot_dimension_numbers<[1], [0], [0], [1], [0, 0, 1, 1], [], []>} : vector<64x128xbf16>, vector<128x128xbf16>, vector<64x128xf32> -> vector<64x128xf32>
    %26 = arith.extf %5 : vector<64x128xbf16> to vector<64x128xf32>
    %27 = arith.addf %26, %25 : vector<64x128xf32>
    %cst_14 = arith.constant 0.000000e+00 : f32
    %28 = vector.broadcast %cst_14 : f32 to vector<64x128xf32>
    %29 = arith.maximumf %27, %28 : vector<64x128xf32>
    %30 = arith.truncf %29 : vector<64x128xf32> to vector<64x128xbf16>
    %cst_15 = arith.constant dense<0.000000e+00> : vector<32x128xf32>
    %31 = tpu.matmul %6, %30, %cst_15 {dimension_numbers = #tpu.dot_dimension_numbers<[1], [0], [0], [1], [0, 0, 1, 1], [], []>} : vector<32x64xbf16>, vector<64x128xbf16>, vector<32x128xf32> -> vector<32x128xf32>
    %32 = arith.truncf %31 : vector<32x128xf32> to vector<32x128xbf16>
    %cst_16 = arith.constant dense<0.000000e+00> : vector<64x128xf32>
    %33 = tpu.matmul %7, %32, %cst_16 {dimension_numbers = #tpu.dot_dimension_numbers<[1], [0], [0], [1], [0, 0, 1, 1], [], []>} : vector<64x32xbf16>, vector<32x128xbf16>, vector<64x128xf32> -> vector<64x128xf32>
    %c63_i32_17 = arith.constant 63 : i32
    %34 = tpu.dynamic_rotate %29 by %c63_i32_17 dim 0 : vector<64x128xf32>, i32 -> vector<64x128xf32>
    %c1_i32_18 = arith.constant 1 : i32
    %35 = tpu.dynamic_rotate %29 by %c1_i32_18 dim 0 : vector<64x128xf32>, i32 -> vector<64x128xf32>
    %36 = vector.shape_cast %13 : vector<64x1xi1> to vector<64x1xi1>
    %37 = vector.broadcast %36 : vector<64x1xi1> to vector<64x128xi1>
    %38 = arith.select %37, %34, %35 : vector<64x128xi1>, vector<64x128xf32>
    %39 = arith.subf %33, %38 : vector<64x128xf32>
    %40 = arith.truncf %39 : vector<64x128xf32> to vector<64x128xbf16>
    %cst_19 = arith.constant dense<0.000000e+00> : vector<64x128xf32>
    %41 = tpu.matmul %40, %8, %cst_19 {dimension_numbers = #tpu.dot_dimension_numbers<[1], [0], [0], [1], [0, 0, 1, 1], [], []>} : vector<64x128xbf16>, vector<128x128xbf16>, vector<64x128xf32> -> vector<64x128xf32>
    %42 = arith.extf %5 : vector<64x128xbf16> to vector<64x128xf32>
    %43 = arith.addf %42, %41 : vector<64x128xf32>
    %cst_20 = arith.constant 0.000000e+00 : f32
    %44 = vector.broadcast %cst_20 : f32 to vector<64x128xf32>
    %45 = arith.maximumf %43, %44 : vector<64x128xf32>
    %46 = arith.truncf %45 : vector<64x128xf32> to vector<64x128xbf16>
    %cst_21 = arith.constant dense<0.000000e+00> : vector<32x128xf32>
    %47 = tpu.matmul %6, %46, %cst_21 {dimension_numbers = #tpu.dot_dimension_numbers<[1], [0], [0], [1], [0, 0, 1, 1], [], []>} : vector<32x64xbf16>, vector<64x128xbf16>, vector<32x128xf32> -> vector<32x128xf32>
    %c0_22 = arith.constant 0 : index
    %c0_23 = arith.constant 0 : index
    %48 = vector.load %arg1[%c0_22, %c0_23] : memref<32x128xbf16, #tpu.memory_space<vmem>>, vector<32x128xbf16>
    %c0_24 = arith.constant 0 : index
    %c0_25 = arith.constant 0 : index
    %49 = vector.load %arg6[%c0_24, %c0_25] : memref<128x128xbf16, #tpu.memory_space<vmem>>, vector<128x128xbf16>
    %cst_26 = arith.constant dense<0.000000e+00> : vector<32x128xf32>
    %50 = tpu.matmul %48, %49, %cst_26 {dimension_numbers = #tpu.dot_dimension_numbers<[1], [0], [0], [1], [0, 0, 1, 1], [], []>} : vector<32x128xbf16>, vector<128x128xbf16>, vector<32x128xf32> -> vector<32x128xf32>
    %51 = arith.truncf %47 : vector<32x128xf32> to vector<32x128xbf16>
    %c0_27 = arith.constant 0 : index
    %c0_28 = arith.constant 0 : index
    %52 = vector.load %arg7[%c0_27, %c0_28] : memref<128x128xbf16, #tpu.memory_space<vmem>>, vector<128x128xbf16>
    %cst_29 = arith.constant dense<0.000000e+00> : vector<32x128xf32>
    %53 = tpu.matmul %51, %52, %cst_29 {dimension_numbers = #tpu.dot_dimension_numbers<[1], [0], [0], [1], [0, 0, 1, 1], [], []>} : vector<32x128xbf16>, vector<128x128xbf16>, vector<32x128xf32> -> vector<32x128xf32>
    %54 = arith.addf %50, %53 : vector<32x128xf32>
    %c0_30 = arith.constant 0 : index
    %c0_31 = arith.constant 0 : index
    %55 = vector.load %arg8[%c0_30, %c0_31] : memref<1x128xf32, #tpu.memory_space<vmem>>, vector<1x128xf32>
    %56 = vector.broadcast %55 : vector<1x128xf32> to vector<32x128xf32>
    %57 = arith.addf %54, %56 : vector<32x128xf32>
    %cst_32 = arith.constant 0.000000e+00 : f32
    %58 = vector.broadcast %cst_32 : f32 to vector<32x128xf32>
    %59 = arith.maximumf %57, %58 : vector<32x128xf32>
    %60 = arith.truncf %59 : vector<32x128xf32> to vector<32x128xbf16>
    %61 = tpu.transpose %60, [1, 0] : vector<32x128xbf16> -> vector<128x32xbf16>
    %c0_33 = arith.constant 0 : index
    %c0_34 = arith.constant 0 : index
    %62 = vector.load %arg9[%c0_33, %c0_34] : memref<128x128xbf16, #tpu.memory_space<vmem>>, vector<128x128xbf16>
    %cst_35 = arith.constant dense<0.000000e+00> : vector<32x128xf32>
    %63 = tpu.matmul %60, %62, %cst_35 {dimension_numbers = #tpu.dot_dimension_numbers<[1], [0], [0], [1], [0, 0, 1, 1], [], []>} : vector<32x128xbf16>, vector<128x128xbf16>, vector<32x128xf32> -> vector<32x128xf32>
    %64 = arith.truncf %63 : vector<32x128xf32> to vector<32x128xbf16>
    %cst_36 = arith.constant dense<0.000000e+00> : vector<32x32xf32>
    %65 = tpu.matmul %64, %61, %cst_36 {dimension_numbers = #tpu.dot_dimension_numbers<[1], [0], [0], [1], [0, 0, 1, 1], [], []>} : vector<32x128xbf16>, vector<128x32xbf16>, vector<32x32xf32> -> vector<32x32xf32>
    %c0_37 = arith.constant 0 : index
    %c0_38 = arith.constant 0 : index
    %66 = vector.load %arg12[%c0_37, %c0_38] : memref<32x1xi32, #tpu.memory_space<vmem>>, vector<32x1xi32>
    %c0_39 = arith.constant 0 : index
    %c0_40 = arith.constant 0 : index
    %67 = vector.load %arg13[%c0_39, %c0_40] : memref<1x32xi32, #tpu.memory_space<vmem>>, vector<1x32xi32>
    %68 = vector.broadcast %66 : vector<32x1xi32> to vector<32x32xi32>
    %69 = vector.broadcast %67 : vector<1x32xi32> to vector<32x32xi32>
    %70 = arith.cmpi eq, %68, %69 : vector<32x32xi32>
    %cst_41 = arith.constant -1.000000e+30 : f32
    %71 = vector.broadcast %cst_41 : f32 to vector<32x32xf32>
    %72 = arith.select %70, %65, %71 : vector<32x32xi1>, vector<32x32xf32>
    %cst_42 = arith.constant dense<0xFF800000> : vector<32xf32>
    %73 = vector.multi_reduction <maximumf>, %72, %cst_42 [1] : vector<32x32xf32> to vector<32xf32>
    %74 = vector.shape_cast %73 : vector<32xf32> to vector<32x1xf32>
    %75 = vector.broadcast %74 : vector<32x1xf32> to vector<32x32xf32>
    %76 = arith.subf %72, %75 : vector<32x32xf32>
    %77 = math.exp %76 : vector<32x32xf32>
    %cst_43 = arith.constant dense<0.000000e+00> : vector<32xf32>
    %78 = vector.multi_reduction <add>, %77, %cst_43 [1] : vector<32x32xf32> to vector<32xf32>
    %79 = vector.shape_cast %78 : vector<32xf32> to vector<32x1xf32>
    %80 = tpu.reciprocal %79 {approx = true} : vector<32x1xf32> -> vector<32x1xf32>
    %81 = vector.broadcast %80 : vector<32x1xf32> to vector<32x32xf32>
    %82 = arith.mulf %77, %81 : vector<32x32xf32>
    %83 = arith.truncf %82 : vector<32x32xf32> to vector<32x32xbf16>
    %cst_44 = arith.constant dense<0.000000e+00> : vector<32x128xf32>
    %84 = tpu.matmul %83, %60, %cst_44 {dimension_numbers = #tpu.dot_dimension_numbers<[1], [0], [0], [1], [0, 0, 1, 1], [], []>} : vector<32x32xbf16>, vector<32x128xbf16>, vector<32x128xf32> -> vector<32x128xf32>
    %85 = arith.truncf %84 : vector<32x128xf32> to vector<32x128xbf16>
    %c0_45 = arith.constant 0 : index
    %c0_46 = arith.constant 0 : index
    %86 = vector.load %arg10[%c0_45, %c0_46] : memref<128x128xbf16, #tpu.memory_space<vmem>>, vector<128x128xbf16>
    %cst_47 = arith.constant dense<0.000000e+00> : vector<32x128xf32>
    %87 = tpu.matmul %85, %86, %cst_47 {dimension_numbers = #tpu.dot_dimension_numbers<[1], [0], [0], [1], [0, 0, 1, 1], [], []>} : vector<32x128xbf16>, vector<128x128xbf16>, vector<32x128xf32> -> vector<32x128xf32>
    %c0_48 = arith.constant 0 : index
    %c0_49 = arith.constant 0 : index
    %88 = vector.load %arg11[%c0_48, %c0_49] : memref<1x128xf32, #tpu.memory_space<vmem>>, vector<1x128xf32>
    %89 = vector.broadcast %88 : vector<1x128xf32> to vector<32x128xf32>
    %90 = arith.addf %87, %89 : vector<32x128xf32>
    %cst_50 = arith.constant 0.000000e+00 : f32
    %91 = vector.broadcast %cst_50 : f32 to vector<32x128xf32>
    %92 = arith.maximumf %90, %91 : vector<32x128xf32>
    %93 = arith.addf %59, %92 : vector<32x128xf32>
    %94 = arith.truncf %93 : vector<32x128xf32> to vector<32x128xbf16>
    %c0_51 = arith.constant 0 : index
    %c0_52 = arith.constant 0 : index
    %95 = vector.load %arg14[%c0_51, %c0_52] : memref<16x32xbf16, #tpu.memory_space<vmem>>, vector<16x32xbf16>
    %cst_53 = arith.constant dense<0.000000e+00> : vector<16x128xf32>
    %96 = tpu.matmul %95, %94, %cst_53 {dimension_numbers = #tpu.dot_dimension_numbers<[1], [0], [0], [1], [0, 0, 1, 1], [], []>} : vector<16x32xbf16>, vector<32x128xbf16>, vector<16x128xf32> -> vector<16x128xf32>
    %c0_54 = arith.constant 0 : index
    %c0_55 = arith.constant 0 : index
    %97 = vector.load %arg15[%c0_54, %c0_55] : memref<16x1xf32, #tpu.memory_space<vmem>>, vector<16x1xf32>
    %cst_56 = arith.constant 1.000000e+00 : f32
    %98 = vector.broadcast %cst_56 : f32 to vector<16x1xf32>
    %99 = arith.maximumf %97, %98 : vector<16x1xf32>
    %100 = vector.broadcast %99 : vector<16x1xf32> to vector<16x128xf32>
    %101 = arith.divf %96, %100 : vector<16x128xf32>
    %c0_57 = arith.constant 0 : index
    %c0_58 = arith.constant 0 : index
    %102 = vector.load %arg16[%c0_57, %c0_58] : memref<16x128xf32, #tpu.memory_space<vmem>>, vector<16x128xf32>
    tpu.vector_store %arg16[%c0_57, %c0_58], %101 {strides = array<i32>} : memref<16x128xf32, #tpu.memory_space<vmem>>, vector<16x128xf32>,
    return
  }
}

</mosaic_0001>

<bundles_post_ra>
// kernel: tpu_custom_call.1
= control target key start
LH: loop header
LB: loop body
LE: loop exit
PB: predicated region body
PF: predicated region fallthrough
CT: control target
= control target key end

     0   :  { %s3733_s0 = inlined_call_operand.hbm [shape: bf16[64,128], index: 0, kind: input, shape index: {}]   ;;  %s3734_s1 = inlined_call_operand.hbm [shape: bf16[32,128], index: 1, kind: input, shape index: {}]   ;;  %s3735_s2 = inlined_call_operand.hbm [shape: bf16[32,64], index: 2, kind: input, shape index: {}]   ;;  %s3736_s3 = inlined_call_operand.hbm [shape: bf16[64,32], index: 3, kind: input, shape index: {}]   ;;  %s3737_s4 = inlined_call_operand.hbm [shape: bf16[128,128], index: 4, kind: input, shape index: {}]   ;;  %s3738_s5 = inlined_call_operand.hbm [shape: bf16[128,128], index: 5, kind: input, shape index: {}]   ;;  %s3739_s6 = inlined_call_operand.hbm [shape: bf16[128,128], index: 6, kind: input, shape index: {}]   ;;  %s3740_s7 = inlined_call_operand.hbm [shape: bf16[128,128], index: 7, kind: input, shape index: {}]   ;;  %s3741_s8 = inlined_call_operand.hbm [shape: f32[1,128], index: 8, kind: input, shape index: {}]   ;;  %s3742_s9 = inlined_call_operand.hbm [shape: bf16[128,128], index: 9, kind: input, shape index: {}]   ;;  %s3743_s10 = inlined_call_operand.hbm [shape: bf16[128,128], index: 10, kind: input, shape index: {}]   ;;  %s3744_s11 = inlined_call_operand.hbm [shape: f32[1,128], index: 11, kind: input, shape index: {}]   ;;  %s3745_s12 = inlined_call_operand.hbm [shape: s32[32,1], index: 12, kind: input, shape index: {}]   ;;  %s3746_s13 = inlined_call_operand.hbm [shape: s32[1,32], index: 13, kind: input, shape index: {}]   ;;  %s3747_s14 = inlined_call_operand.hbm [shape: bf16[16,32], index: 14, kind: input, shape index: {}]   ;;  %s3748_s15 = inlined_call_operand.hbm [shape: f32[16,1], index: 15, kind: input, shape index: {}]   ;;  %s3749_s16 = inlined_call_operand.hbm [shape: f32[16,128], index: 16, kind: output, shape index: {}]  }
   0x1   :  { %3752 = sst [smem:[#allocation39_spill]] %s3733_s0 }
   0x2   :  { %21 = vsyncpa [#allocation3], 0 }
   0x3   :  { %22 = vsyncpa [#allocation6], 0 }
   0x4   :  { %23 = vsyncpa [#allocation9], 0 }
   0x5   :  { %24 = vsyncpa [#allocation12], 0 }
   0x6   :  { %25 = vsyncpa [#allocation15], 0 }
   0x7   :  { %26 = vsyncpa [#allocation18], 0 }
   0x8   :  { %27 = vsyncpa [#allocation21], 0 }
   0x9   :  { %28 = vsyncpa [#allocation24], 0 }
   0xa   :  { %29 = vsyncpa [#allocation27], 0 }
   0xb   :  { %30 = vsyncpa [#allocation4], 0  ;;  %s2897_s21 = smov [#allocation5]   ;;  %s2898_s23 = smov [#allocation8]  }
   0xc   :  { %s48_s22 = sshll.u32 %s2897_s21, 4  ;;  %s72_s24 = sshll.u32 %s2898_s23, 4  ;;  %s49_s22 = int_to_ptr.vmem [resolvable:$true] %s48_s22  ;;  %s3006_s24 = int_to_ptr.vmem [resolvable:$true] %s72_s24 }
   0xd   :  { %s2503_s27 = scalar_lea.hbm %s3734_s1, 256 }
   0xe   :  { %p2504_p0 = scmp.ne.s32.totalorder %s3734_s1, %s2503_s27  ;;  %p2507_p1 = scmp.lt.u32.totalorder %s2503_s27, %s3734_s1 }
  0x10   :  { %p2509_p2 = pnand %p2507_p1, %p2504_p0 }
  0x12   :  { %2512 = shalt.err (!%p2509_p2)
}
  0x13   :  { %s2513_s17 = scalar_lea.vmem %s49_s22, 256  ;;  %p2518_p4 = scmp.lt.s32.totalorder %s49_s22, %s49_s22 }
  0x14   :  { %p2514_p3 = scmp.ne.s32.totalorder %s49_s22, %s2513_s17  ;;  %p2519_p5 = scmp.lt.s32.totalorder %s2513_s17, %s2513_s17 }
  0x16   :  { %p2520_p6 = por %p2519_p5, %p2518_p4 }
  0x18   :  { %p2521_p7 = pnand %p2520_p6, %p2514_p3 }
  0x1a   :  { %2524 = shalt.err (!%p2521_p7)
}
  0x1b   :  { %s2899_s18 = smov 64   ;;  %s2900_s19 = smov 4  }
  0x1c   :  { %54 = dma.hbm_to_vmem [thread:$0]  %s3734_s1, 256, %s49_s22, [#allocation6], %s2899_s18, %s2899_s18, %s2900_s19  }
  0x1d   :  { %s2525_s26 = scalar_lea.hbm %s3736_s3, 512 }
  0x1e   :  { %p2526_p8 = scmp.ne.s32.totalorder %s3736_s3, %s2525_s26  ;;  %p2529_p9 = scmp.lt.u32.totalorder %s2525_s26, %s3736_s3 }
  0x20   :  { %p2531_p10 = pnand %p2529_p9, %p2526_p8 }
  0x22   :  { %2534 = shalt.err (!%p2531_p10)
}
  0x23   :  { %s2535_s0 = scalar_lea.vmem %s3006_s24, 512  ;;  %p2540_p12 = scmp.lt.s32.totalorder %s3006_s24, %s3006_s24 }
  0x24   :  { %p2536_p11 = scmp.ne.s32.totalorder %s3006_s24, %s2535_s0  ;;  %p2541_p13 = scmp.lt.s32.totalorder %s2535_s0, %s2535_s0 }
  0x26   :  { %p2542_p0 = por %p2541_p13, %p2540_p12 }
  0x28   :  { %p2543_p1 = pnand %p2542_p0, %p2536_p11 }
  0x2a   :  { %2546 = shalt.err (!%p2543_p1)
}
  0x2b   :  { %78 = dma.hbm_to_vmem [thread:$0]  %s3736_s3, 512, %s3006_s24, [#allocation9], %s2899_s18, %s2899_s18, %s2900_s19  }
  0x2c   :  { %s2901_s17 = smov [#allocation11]   ;;  %s2902_s21 = smov [#allocation14]  }
  0x2d   :  { %s96_s20 = sshll.u32 %s2901_s17, 4  ;;  %s120_s23 = sshll.u32 %s2902_s21, 4  ;;  %s97_s20 = int_to_ptr.vmem [resolvable:$true] %s96_s20  ;;  %s3043_s23 = int_to_ptr.vmem [resolvable:$true] %s120_s23 }
  0x2e   :  { %s2547_s27 = scalar_lea.hbm %s3738_s5, 1024 }
  0x2f   :  { %p2548_p2 = scmp.ne.s32.totalorder %s3738_s5, %s2547_s27  ;;  %p2551_p3 = scmp.lt.u32.totalorder %s2547_s27, %s3738_s5 }
  0x31   :  { %p2553_p4 = pnand %p2551_p3, %p2548_p2 }
  0x33   :  { %2556 = shalt.err (!%p2553_p4)
}
  0x34   :  { %s2557_s3 = scalar_lea.vmem %s97_s20, 1024  ;;  %p2562_p6 = scmp.lt.s32.totalorder %s97_s20, %s97_s20 }
  0x35   :  { %p2558_p5 = scmp.ne.s32.totalorder %s97_s20, %s2557_s3  ;;  %p2563_p7 = scmp.lt.s32.totalorder %s2557_s3, %s2557_s3 }
  0x37   :  { %p2564_p8 = por %p2563_p7, %p2562_p6 }
  0x39   :  { %p2565_p9 = pnand %p2564_p8, %p2558_p5 }
  0x3b   :  { %2568 = shalt.err (!%p2565_p9)
}
  0x3c   :  { %102 = dma.hbm_to_vmem [thread:$0]  %s3738_s5, 1024, %s97_s20, [#allocation12], %s2899_s18, %s2899_s18, %s2900_s19  }
  0x3d   :  { %s2569_s21 = scalar_lea.hbm %s3740_s7, 1024 }
  0x3e   :  { %p2570_p10 = scmp.ne.s32.totalorder %s3740_s7, %s2569_s21  ;;  %p2573_p11 = scmp.lt.u32.totalorder %s2569_s21, %s3740_s7 }
  0x40   :  { %p2575_p12 = pnand %p2573_p11, %p2570_p10 }
  0x42   :  { %2578 = shalt.err (!%p2575_p12)
}
  0x43   :  { %s2579_s29 = scalar_lea.vmem %s3043_s23, 1024  ;;  %p2584_p0 = scmp.lt.s32.totalorder %s3043_s23, %s3043_s23 }
  0x44   :  { %p2580_p13 = scmp.ne.s32.totalorder %s3043_s23, %s2579_s29  ;;  %p2585_p1 = scmp.lt.s32.totalorder %s2579_s29, %s2579_s29 }
  0x46   :  { %p2586_p2 = por %p2585_p1, %p2584_p0 }
  0x48   :  { %p2587_p3 = pnand %p2586_p2, %p2580_p13 }
  0x4a   :  { %2590 = shalt.err (!%p2587_p3)
}
  0x4b   :  { %126 = dma.hbm_to_vmem [thread:$0]  %s3740_s7, 1024, %s3043_s23, [#allocation15], %s2899_s18, %s2899_s18, %s2900_s19  }
  0x4c   :  { %s2903_s30 = smov [#allocation17]   ;;  %s2904_s3 = smov [#allocation20]  }
  0x4d   :  { %s142_s0 = sshll.u32 %s2903_s30, 4  ;;  %s167_s24 = sshll.u32 %s2904_s3, 4  ;;  %s143_s0 = int_to_ptr.vmem [resolvable:$true] %s142_s0  ;;  %s168_s24 = int_to_ptr.vmem [resolvable:$true] %s167_s24 }
  0x4e   :  { %s2591_s17 = scalar_lea.hbm %s3742_s9, 1024 }
  0x4f   :  { %p2592_p4 = scmp.ne.s32.totalorder %s3742_s9, %s2591_s17  ;;  %p2595_p5 = scmp.lt.u32.totalorder %s2591_s17, %s3742_s9 }
  0x51   :  { %p2597_p6 = pnand %p2595_p5, %p2592_p4 }
  0x53   :  { %2600 = shalt.err (!%p2597_p6)
}
  0x54   :  { %s2601_s7 = scalar_lea.vmem %s143_s0, 1024  ;;  %p2606_p8 = scmp.lt.s32.totalorder %s143_s0, %s143_s0 }
  0x55   :  { %p2602_p7 = scmp.ne.s32.totalorder %s143_s0, %s2601_s7  ;;  %p2607_p9 = scmp.lt.s32.totalorder %s2601_s7, %s2601_s7 }
  0x57   :  { %p2608_p10 = por %p2607_p9, %p2606_p8 }
  0x59   :  { %p2609_p11 = pnand %p2608_p10, %p2602_p7 }
  0x5b   :  { %2612 = shalt.err (!%p2609_p11)
}
  0x5c   :  { %148 = dma.hbm_to_vmem [thread:$0]  %s3742_s9, 1024, %s143_s0, [#allocation18], %s2899_s18, %s2899_s18, %s2900_s19  }
  0x5d   :  { %s2613_s20 = scalar_lea.hbm %s3744_s11, 16 }
  0x5e   :  { %p2614_p12 = scmp.ne.s32.totalorder %s3744_s11, %s2613_s20  ;;  %p2617_p13 = scmp.lt.u32.totalorder %s2613_s20, %s3744_s11 }
  0x60   :  { %p2619_p0 = pnand %p2617_p13, %p2614_p12 }
  0x62   :  { %2622 = shalt.err (!%p2619_p0)
}
  0x63   :  { %s2623_s17 = scalar_lea.vmem %s168_s24, 16  ;;  %s2627_s21 = scalar_lea.vmem %s168_s24, 32 }
  0x64   :  { %p2624_p1 = scmp.ne.s32.totalorder %s168_s24, %s2623_s17  ;;  %p2628_p2 = scmp.lt.s32.totalorder %s168_s24, %s168_s24 }
  0x65   :  { %p2629_p3 = scmp.lt.s32.totalorder %s2627_s21, %s2623_s17 }
  0x67   :  { %p2630_p4 = por %p2629_p3, %p2628_p2 }
  0x69   :  { %p2631_p5 = pnand %p2630_p4, %p2624_p1 }
  0x6b   :  { %2634 = shalt.err (!%p2631_p5)
}
  0x6c   :  { %170 = dma.hbm_to_vmem [thread:$0]  %s3744_s11, 16, %s168_s24, [#allocation21]  }
  0x6d   :  { %s2905_s25 = smov [#allocation23]   ;;  %s2906_s27 = smov [#allocation2]  }
  0x6e   :  { %s189_s26 = sshll.u32 %s2905_s25, 4  ;;  %s36_s7 = sshll.u32 %s2906_s27, 4  ;;  %s190_s26 = int_to_ptr.vmem [resolvable:$true] %s189_s26  ;;  %s3107_s7 = int_to_ptr.vmem [resolvable:$true] %s36_s7 }
  0x6f   :  { %s2635_s29 = scalar_lea.hbm %s3746_s13, 16 }
  0x70   :  { %p2636_p6 = scmp.ne.s32.totalorder %s3746_s13, %s2635_s29  ;;  %p2639_p7 = scmp.lt.u32.totalorder %s2635_s29, %s3746_s13 }
  0x72   :  { %p2641_p8 = pnand %p2639_p7, %p2636_p6 }
  0x74   :  { %2644 = shalt.err (!%p2641_p8)
}
  0x75   :  { %s2645_s11 = scalar_lea.vmem %s190_s26, 16  ;;  %s2649_s24 = scalar_lea.vmem %s190_s26, 32 }
  0x76   :  { %p2646_p9 = scmp.ne.s32.totalorder %s190_s26, %s2645_s11  ;;  %p2650_p10 = scmp.lt.s32.totalorder %s190_s26, %s190_s26 }
  0x77   :  { %p2651_p11 = scmp.lt.s32.totalorder %s2649_s24, %s2645_s11 }
  0x79   :  { %p2652_p12 = por %p2651_p11, %p2650_p10 }
  0x7b   :  { %p2653_p13 = pnand %p2652_p12, %p2646_p9 }
  0x7d   :  { %2656 = shalt.err (!%p2653_p13)
}
  0x7e   :  { %192 = dma.hbm_to_vmem [thread:$0]  %s3746_s13, 16, %s190_s26, [#allocation24]  }
  0x7f   :  { %s3753_s9 = sld [smem:[#allocation39_spill]] }
  0x85   :  { %s2657_s0 = scalar_lea.hbm %s3753_s9, 512 }
  0x86   :  { %p2658_p0 = scmp.ne.s32.totalorder %s3753_s9, %s2657_s0  ;;  %p2661_p1 = scmp.lt.u32.totalorder %s2657_s0, %s3753_s9 }
  0x88   :  { %p2663_p2 = pnand %p2661_p1, %p2658_p0 }
  0x8a   :  { %2666 = shalt.err (!%p2663_p2)
}
  0x8b   :  { %s2667_s29 = scalar_lea.vmem %s3107_s7, 512  ;;  %p2672_p4 = scmp.lt.s32.totalorder %s3107_s7, %s3107_s7 }
  0x8c   :  { %p2668_p3 = scmp.ne.s32.totalorder %s3107_s7, %s2667_s29  ;;  %p2673_p5 = scmp.lt.s32.totalorder %s2667_s29, %s2667_s29 }
  0x8e   :  { %p2674_p6 = por %p2673_p5, %p2672_p4 }
  0x90   :  { %p2675_p7 = pnand %p2674_p6, %p2668_p3 }
  0x92   :  { %2678 = shalt.err (!%p2675_p7)
}
  0x93   :  { %42 = dma.hbm_to_vmem [thread:$0]  %s3753_s9, 512, %s3107_s7, [#allocation3], %s2899_s18, %s2899_s18, %s2900_s19  }
  0x94   :  { %s2907_s5 = smov [#allocation7]   ;;  %s2908_s30 = smov [#allocation10]  }
  0x95   :  { %s60_s20 = sshll.u32 %s2907_s5, 4  ;;  %s84_s3 = sshll.u32 %s2908_s30, 4  ;;  %s61_s20 = int_to_ptr.vmem [resolvable:$true] %s60_s20  ;;  %s3141_s3 = int_to_ptr.vmem [resolvable:$true] %s84_s3 }
  0x96   :  { %s2679_s1 = scalar_lea.hbm %s3735_s2, 256 }
  0x97   :  { %p2680_p8 = scmp.ne.s32.totalorder %s3735_s2, %s2679_s1  ;;  %p2683_p9 = scmp.lt.u32.totalorder %s2679_s1, %s3735_s2 }
  0x99   :  { %p2685_p10 = pnand %p2683_p9, %p2680_p8 }
  0x9b   :  { %2688 = shalt.err (!%p2685_p10)
}
  0x9c   :  { %s2689_s7 = scalar_lea.vmem %s61_s20, 256  ;;  %p2694_p12 = scmp.lt.s32.totalorder %s61_s20, %s61_s20 }
  0x9d   :  { %p2690_p11 = scmp.ne.s32.totalorder %s61_s20, %s2689_s7  ;;  %p2695_p13 = scmp.lt.s32.totalorder %s2689_s7, %s2689_s7 }
  0x9f   :  { %p2696_p0 = por %p2695_p13, %p2694_p12 }
  0xa1   :  { %p2697_p1 = pnand %p2696_p0, %p2690_p11 }
  0xa3   :  { %2700 = shalt.err (!%p2697_p1)
}
  0xa4   :  { %66 = dma.hbm_to_vmem [thread:$0]  %s3735_s2, 256, %s61_s20, [#allocation6], %s2899_s18, %s2899_s18, %s2900_s19  }
  0xa5   :  { %s2701_s28 = scalar_lea.hbm %s3737_s4, 1024 }
  0xa6   :  { %p2702_p2 = scmp.ne.s32.totalorder %s3737_s4, %s2701_s28  ;;  %p2705_p3 = scmp.lt.u32.totalorder %s2701_s28, %s3737_s4 }
  0xa8   :  { %p2707_p4 = pnand %p2705_p3, %p2702_p2 }
  0xaa   :  { %2710 = shalt.err (!%p2707_p4)
}
  0xab   :  { %s2711_s30 = scalar_lea.vmem %s3141_s3, 1024  ;;  %p2716_p6 = scmp.lt.s32.totalorder %s3141_s3, %s3141_s3 }
  0xac   :  { %p2712_p5 = scmp.ne.s32.totalorder %s3141_s3, %s2711_s30  ;;  %p2717_p7 = scmp.lt.s32.totalorder %s2711_s30, %s2711_s30 }
  0xae   :  { %p2718_p8 = por %p2717_p7, %p2716_p6 }
  0xb0   :  { %p2719_p9 = pnand %p2718_p8, %p2712_p5 }
  0xb2   :  { %2722 = shalt.err (!%p2719_p9)
}
  0xb3   :  { %90 = dma.hbm_to_vmem [thread:$0]  %s3737_s4, 1024, %s3141_s3, [#allocation9], %s2899_s18, %s2899_s18, %s2900_s19  }
  0xb4   :  { %s2909_s11 = smov [#allocation13]   ;;  %s2910_s1 = smov [#allocation16]  }
  0xb5   :  { %s108_s24 = sshll.u32 %s2909_s11, 4  ;;  %s133_s22 = sshll.u32 %s2910_s1, 4  ;;  %s109_s24 = int_to_ptr.vmem [resolvable:$true] %s108_s24  ;;  %s134_s22 = int_to_ptr.vmem [resolvable:$true] %s133_s22 }
  0xb6   :  { %s2723_s0 = scalar_lea.hbm %s3739_s6, 1024 }
  0xb7   :  { %p2724_p10 = scmp.ne.s32.totalorder %s3739_s6, %s2723_s0  ;;  %p2727_p11 = scmp.lt.u32.totalorder %s2723_s0, %s3739_s6 }
  0xb9   :  { %p2729_p12 = pnand %p2727_p11, %p2724_p10 }
  0xbb   :  { %2732 = shalt.err (!%p2729_p12)
}
  0xbc   :  { %s2733_s4 = scalar_lea.vmem %s109_s24, 1024  ;;  %p2738_p0 = scmp.lt.s32.totalorder %s109_s24, %s109_s24 }
  0xbd   :  { %p2734_p13 = scmp.ne.s32.totalorder %s109_s24, %s2733_s4  ;;  %p2739_p1 = scmp.lt.s32.totalorder %s2733_s4, %s2733_s4 }
  0xbf   :  { %p2740_p2 = por %p2739_p1, %p2738_p0 }
  0xc1   :  { %p2741_p3 = pnand %p2740_p2, %p2734_p13 }
  0xc3   :  { %2744 = shalt.err (!%p2741_p3)
}
  0xc4   :  { %114 = dma.hbm_to_vmem [thread:$0]  %s3739_s6, 1024, %s109_s24, [#allocation12], %s2899_s18, %s2899_s18, %s2900_s19  }
  0xc5   :  { %s2745_s13 = scalar_lea.hbm %s3741_s8, 16 }
  0xc6   :  { %p2746_p4 = scmp.ne.s32.totalorder %s3741_s8, %s2745_s13  ;;  %p2749_p5 = scmp.lt.u32.totalorder %s2745_s13, %s3741_s8 }
  0xc8   :  { %p2751_p6 = pnand %p2749_p5, %p2746_p4 }
  0xca   :  { %2754 = shalt.err (!%p2751_p6)
}
  0xcb   :  { %s2755_s20 = scalar_lea.vmem %s134_s22, 16  ;;  %s2759_s11 = scalar_lea.vmem %s134_s22, 32 }
  0xcc   :  { %p2756_p7 = scmp.ne.s32.totalorder %s134_s22, %s2755_s20  ;;  %p2760_p8 = scmp.lt.s32.totalorder %s134_s22, %s134_s22 }
  0xcd   :  { %p2761_p9 = scmp.lt.s32.totalorder %s2759_s11, %s2755_s20 }
  0xcf   :  { %p2762_p10 = por %p2761_p9, %p2760_p8 }
  0xd1   :  { %p2763_p11 = pnand %p2762_p10, %p2756_p7 }
  0xd3   :  { %2766 = shalt.err (!%p2763_p11)
}
  0xd4   :  { %136 = dma.hbm_to_vmem [thread:$0]  %s3741_s8, 16, %s134_s22, [#allocation15]  }
  0xd5   :  { %s2911_s1 = smov [#allocation19]   ;;  %s2912_s21 = smov [#allocation22]  }
  0xd6   :  { %s154_s17 = sshll.u32 %s2911_s1, 4  ;;  %s176_s0 = sshll.u32 %s2912_s21, 4  ;;  %s155_s17 = int_to_ptr.vmem [resolvable:$true] %s154_s17  ;;  %s3205_s0 = int_to_ptr.vmem [resolvable:$true] %s176_s0 }
  0xd7   :  { %s2767_s25 = scalar_lea.hbm %s3743_s10, 1024 }
  0xd8   :  { %p2768_p12 = scmp.ne.s32.totalorder %s3743_s10, %s2767_s25  ;;  %p2771_p13 = scmp.lt.u32.totalorder %s2767_s25, %s3743_s10 }
  0xda   :  { %p2773_p0 = pnand %p2771_p13, %p2768_p12 }
  0xdc   :  { %2776 = shalt.err (!%p2773_p0)
}
  0xdd   :  { %s2777_s8 = scalar_lea.vmem %s155_s17, 1024  ;;  %p2782_p2 = scmp.lt.s32.totalorder %s155_s17, %s155_s17 }
  0xde   :  { %p2778_p1 = scmp.ne.s32.totalorder %s155_s17, %s2777_s8  ;;  %p2783_p3 = scmp.lt.s32.totalorder %s2777_s8, %s2777_s8 }
  0xe0   :  { %p2784_p4 = por %p2783_p3, %p2782_p2 }
  0xe2   :  { %p2785_p5 = pnand %p2784_p4, %p2778_p1 }
  0xe4   :  { %2788 = shalt.err (!%p2785_p5)
}
  0xe5   :  { %160 = dma.hbm_to_vmem [thread:$0]  %s3743_s10, 1024, %s155_s17, [#allocation18], %s2899_s18, %s2899_s18, %s2900_s19  }
  0xe6   :  { %s2789_s26 = scalar_lea.hbm %s3745_s12, 512 }
  0xe7   :  { %p2790_p6 = scmp.ne.s32.totalorder %s3745_s12, %s2789_s26  ;;  %p2793_p7 = scmp.lt.u32.totalorder %s2789_s26, %s3745_s12 }
  0xe9   :  { %p2795_p8 = pnand %p2793_p7, %p2790_p6 }
  0xeb   :  { %2798 = shalt.err (!%p2795_p8)
}
  0xec   :  { %s2799_s11 = scalar_lea.vmem %s3205_s0, 512  ;;  %p2804_p10 = scmp.lt.s32.totalorder %s3205_s0, %s3205_s0 }
  0xed   :  { %p2800_p9 = scmp.ne.s32.totalorder %s3205_s0, %s2799_s11  ;;  %p2805_p11 = scmp.lt.s32.totalorder %s2799_s11, %s2799_s11 }
  0xef   :  { %p2806_p12 = por %p2805_p11, %p2804_p10 }
  0xf1   :  { %p2807_p13 = pnand %p2806_p12, %p2800_p9 }
  0xf3   :  { %2810 = shalt.err (!%p2807_p13)
}
  0xf4   :  { %s2913_s10 = smov 128   ;;  %s2914_s6 = smov 8  }
  0xf5   :  { %182 = dma.hbm_to_vmem [thread:$0]  %s3745_s12, 512, %s3205_s0, [#allocation21], %s2913_s10, %s2913_s10, %s2914_s6  }
  0xf6   :  { %s2915_s17 = smov [#allocation25]   ;;  %s2916_s7 = smov [#allocation26]  }
  0xf7   :  { %s198_s21 = sshll.u32 %s2915_s17, 4  ;;  %s210_s9 = sshll.u32 %s2916_s7, 4  ;;  %s199_s21 = int_to_ptr.vmem [resolvable:$true] %s198_s21  ;;  %s3242_s9 = int_to_ptr.vmem [resolvable:$true] %s210_s9 }
  0xf8   :  { %s2811_s4 = scalar_lea.hbm %s3747_s14, 128 }
  0xf9   :  { %p2812_p0 = scmp.ne.s32.totalorder %s3747_s14, %s2811_s4  ;;  %p2815_p1 = scmp.lt.u32.totalorder %s2811_s4, %s3747_s14 }
  0xfb   :  { %p2817_p2 = pnand %p2815_p1, %p2812_p0 }
  0xfd   :  { %2820 = shalt.err (!%p2817_p2)
}
  0xfe   :  { %s2821_s12 = scalar_lea.vmem %s199_s21, 128  ;;  %p2826_p4 = scmp.lt.s32.totalorder %s199_s21, %s199_s21 }
  0xff   :  { %p2822_p3 = scmp.ne.s32.totalorder %s199_s21, %s2821_s12  ;;  %p2827_p5 = scmp.lt.s32.totalorder %s2821_s12, %s2821_s12 }
 0x101   :  { %p2828_p6 = por %p2827_p5, %p2826_p4 }
 0x103   :  { %p2829_p7 = pnand %p2828_p6, %p2822_p3 }
 0x105   :  { %2832 = shalt.err (!%p2829_p7)
}
 0x106   :  { %204 = dma.hbm_to_vmem [thread:$0]  %s3747_s14, 128, %s199_s21, [#allocation24], %s2899_s18, %s2899_s18, %s2900_s19  }
 0x107   :  { %s2833_s26 = scalar_lea.hbm %s3748_s15, 256 }
 0x108   :  { %p2834_p8 = scmp.ne.s32.totalorder %s3748_s15, %s2833_s26  ;;  %p2837_p9 = scmp.lt.u32.totalorder %s2833_s26, %s3748_s15 }
 0x10a   :  { %p2839_p10 = pnand %p2837_p9, %p2834_p8 }
 0x10c   :  { %2842 = shalt.err (!%p2839_p10)
}
 0x10d   :  { %s2843_s11 = scalar_lea.vmem %s3242_s9, 256  ;;  %p2848_p12 = scmp.lt.s32.totalorder %s3242_s9, %s3242_s9 }
 0x10e   :  { %p2844_p11 = scmp.ne.s32.totalorder %s3242_s9, %s2843_s11  ;;  %p2849_p13 = scmp.lt.s32.totalorder %s2843_s11, %s2843_s11 }
 0x110   :  { %p2850_p0 = por %p2849_p13, %p2848_p12 }
 0x112   :  { %p2851_p1 = pnand %p2850_p0, %p2844_p11 }
 0x114   :  { %2854 = shalt.err (!%p2851_p1)
}
 0x115   :  { %216 = dma.hbm_to_vmem [thread:$0]  %s3748_s15, 256, %s3242_s9, [#allocation27], %s2913_s10, %s2913_s10, %s2914_s6  }
 0x116   :  { %2877 = dma.done.wait [#allocation3], 512  }
 0x117   :  { %2878 = vsyncadd [#allocation3], 4294966784 }
 0x118   :  { %2879 = dma.done.wait [#allocation6], 512  }
 0x119   :  { %2880 = vsyncadd [#allocation6], 4294966784 }
 0x11a   :  { %2881 = dma.done.wait [#allocation9], 1536  }
 0x11b   :  { %2882 = vsyncadd [#allocation9], 4294965760 }
 0x11c   :  { %2883 = dma.done.wait [#allocation12], 2048  }
 0x11d   :  { %2884 = vsyncadd [#allocation12], 4294965248 }
 0x11e   :  { %2885 = dma.done.wait [#allocation15], 1040  }
 0x11f   :  { %2886 = vsyncadd [#allocation15], 4294966256 }
 0x120   :  { %2887 = dma.done.wait [#allocation18], 2048  }
 0x121   :  { %2888 = vsyncadd [#allocation18], 4294965248 }
 0x122   :  { %2889 = dma.done.wait [#allocation21], 528  }
 0x123   :  { %2890 = vsyncadd [#allocation21], 4294966768 }
 0x124   :  { %2891 = dma.done.wait [#allocation24], 144  }
 0x125   :  { %2892 = vsyncadd [#allocation24], 4294967152 }
 0x126   :  { %2893 = dma.done.wait [#allocation27], 256  }
 0x127   :  { %2894 = vsyncadd [#allocation27], 4294967040  ;;  %v2422_v0 = vld [vmem:[#allocation10] sm:$0xff]   ;;  %v2423_v1 = vld [vmem:[#allocation10 + $0x8] sm:$0xff]   ;;  %vm506_vm0 = vcmask 523264   ;;  %v467_v13 = vlaneseq  ;;  %vm584_vm11 = vcmask 261120  }
 0x128   :  { %2156 = vmatprep.subr.bf16.mxu0 %v2422_v0  ;;  %v2424_v2 = vld [vmem:[#allocation10 + $0x10] sm:$0xff]   ;;  %v2425_v3 = vld [vmem:[#allocation10 + $0x18] sm:$0xff]   ;;  %v2430_v4 = vld [vmem:[#allocation2] sm:$0xff]   ;;  %s2920_s15 = smov [#allocation28]  }
 0x129   :  { %2157 = vmatpush3.bf16.msra.mxu0 %v2422_v0  ;;  %2172 = vmatprep.mubr.bf16.mxu0 %v2430_v4  ;;  %v2426_v5 = vld [vmem:[#allocation10 + $0x20] sm:$0xff]   ;;  %v2427_v6 = vld [vmem:[#allocation10 + $0x28] sm:$0xff]   ;;  %v2428_v7 = vld [vmem:[#allocation10 + $0x30] sm:$0xff]   ;;  %v3285_v14 = vshrl.u32 %v467_v13, 7  ;;  %s1938_s19 = sshll.u32 %s2920_s15, 4  ;;  %s1939_s19 = int_to_ptr.vmem [resolvable:$true] %s1938_s19 }
 0x12a   :  { %2158 = vmatprep.subr.bf16.mxu0 %v2423_v1  ;;  %v2429_v8 = vld [vmem:[#allocation10 + $0x38] sm:$0xff]   ;;  %v2431_v9 = vld [vmem:[#allocation2 + $0x8] sm:$0xff]   ;;  %v2432_v10 = vld [vmem:[#allocation2 + $0x10] sm:$0xff]   ;;  %s2855_s24 = scalar_lea.vmem %s1939_s19, 256  ;;  %p2860_p3 = scmp.lt.s32.totalorder %s1939_s19, %s1939_s19 }
 0x12b   :  { %v2433_v11 = vld [vmem:[#allocation2 + $0x18] sm:$0xff]   ;;  %v3279_v12 = vld [vmem:[#allocation7] sm:$0xff]   ;;  %v470_v15 = vadd.s32 16, %v3285_v14  ;;  %v469_v16 = vadd.s32 8, %v3285_v14  ;;  %v471_v18 = vadd.s32 24, %v3285_v14  ;;  %v474_v20 = vadd.s32 48, %v3285_v14  ;;  %p2856_p2 = scmp.ne.s32.totalorder %s1939_s19, %s2855_s24  ;;  %p2861_p4 = scmp.lt.s32.totalorder %s2855_s24, %s2855_s24 }
 0x12c   :  { %2188 = vmatprep.mubr.msk.bf16.mxu1 %vm506_vm0, %v3279_v12  ;;  %v472_v21 = vadd.s32 32, %v3285_v14  ;;  %v475_v22 = vadd.s32 56, %v3285_v14  ;;  %vm670_vm1 = vcmp.lt.s32.totalorder %v3285_v14, 7  ;;  %vm687_vm2 = vcmp.lt.s32.totalorder %v3285_v14, 1 }
 0x12d   :  { %2159 = vmatpush3.bf16.msra.mxu0 %v2423_v1  ;;  %v478_v17 = vand.u32 1, %v470_v15  ;;  %v477_v19 = vand.u32 1, %v469_v16  ;;  %v479_v27 = vand.u32 1, %v471_v18  ;;  %v476_v31 = vand.u32 1, %v3285_v14  ;;  %p2862_p5 = por %p2861_p4, %p2860_p3 }
 0x12e   :  { %2160 = vmatprep.subr.bf16.mxu0 %v2424_v2  ;;  %v482_v32 = vand.u32 1, %v474_v20  ;;  %v480_v33 = vand.u32 1, %v472_v21  ;;  %v483_v37 = vand.u32 1, %v475_v22  ;;  %v473_v38 = vadd.s32 40, %v3285_v14 }
 0x12f   :  { %vm3295_vm3 = vcmp.eq.s32.totalorder %v478_v17, 0  ;;  %vm3299_vm4 = vcmp.eq.s32.totalorder %v477_v19, 0  ;;  %vm3318_vm5 = vcmp.eq.s32.totalorder %v479_v27, 0  ;;  %vm3346_vm6 = vcmp.eq.s32.totalorder %v476_v31, 0  ;;  %p2863_p6 = pnand %p2862_p5, %p2856_p2 }
 0x130   :  { %v481_v54 = vand.u32 1, %v473_v38  ;;  %vm3354_vm7 = vcmp.eq.s32.totalorder %v482_v32, 0  ;;  %vm3358_vm8 = vcmp.eq.s32.totalorder %v480_v33, 0  ;;  %vm3362_vm9 = vcmp.eq.s32.totalorder %v483_v37, 0 }
 0x131   :  { %2161 = vmatpush3.bf16.msra.mxu0 %v2424_v2 }
 0x132   :  { %2162 = vmatprep.subr.bf16.mxu0 %v2425_v3  ;;  %vm3368_vm10 = vcmp.eq.s32.totalorder %v481_v54, 0 }
 0x135   :  { %2163 = vmatpush3.bf16.msra.mxu0 %v2425_v3 }
 0x136   :  { %2164 = vmatprep.subr.bf16.mxu0 %v2426_v5 }
 0x139   :  { %2165 = vmatpush3.bf16.msra.mxu0 %v2426_v5 }
 0x13a   :  { %2166 = vmatprep.subr.bf16.mxu0 %v2427_v6 }
 0x13d   :  { %2167 = vmatpush3.bf16.msra.mxu0 %v2427_v6 }
 0x13e   :  { %2168 = vmatprep.subr.bf16.mxu0 %v2428_v7 }
 0x141   :  { %2169 = vmatpush3.bf16.msra.mxu0 %v2428_v7 }
 0x142   :  { %2170 = vmatprep.subr.bf16.mxu0 %v2429_v8 }
 0x145   :  { %2171 = vmatpush3.bf16.msra.mxu0 %v2429_v8 }
 0x148   :  { %2173 = vmatmul.mubr.bf16.vlgmr.msra.gmra.mrb[0].mxu0 %v2431_v9 }
 0x149   :  { %2176 = vmatprep.mubr.bf16.mxu0 %v2432_v10 }
 0x150   :  { %2177 = vmatmul.mubr.bf16.gmra.mrb[4].mxu0 %v2433_v11 }
 0x151   :  { %2236 = vmatprep.mubr.msk.bf16.mxu0 %vm506_vm0, %v3279_v12 }
 0x21b   :  { %v2174_v23 = vpop.f32.mrb[0].mxu0 }
 0x21c   :  { %v429_v24 = vmax.f32 %v2174_v23, 0.0  ;;  %v396_v25 = vpop.f32.mrb[1].mxu0 }
 0x21d   :  { %v3303_v29 = vmax.f32 %v396_v25, 0.0  ;;  %v2175_v30 = vpop.f32.mrb[2].mxu0 }
 0x21e   :  { %v430_v34 = vmax.f32 %v2175_v30, 0.0  ;;  %v3306_v35 = vpack.c.bf16 %v2175_v30, %v2174_v23  ;;  %v399_v36 = vpop.f32.mrb[3].mxu0  ;;  %v664_v39 = vrot.slane %v429_v24, 1  ;;  %v681_v40 = vrot.slane %v429_v24, 7 }
 0x21f   :  { %v428_v41 = vmax.f32 %v399_v36, 0.0  ;;  %v3309_v42 = vpack.c.bf16 %v399_v36, %v396_v25  ;;  %v662_v43 = vrot.slane %v3303_v29, 1  ;;  %v679_v47 = vrot.slane %v3303_v29, 7 }
 0x220   :  { %v665_v44 = vrot.slane %v430_v34, 1  ;;  %v682_v45 = vrot.slane %v430_v34, 7  ;;  %v493_v46 = vpack.c.bf16 %v430_v34, %v429_v24 }
 0x221   :  { %v663_v48 = vrot.slane %v428_v41, 1  ;;  %v680_v49 = vrot.slane %v428_v41, 7  ;;  %v492_v50 = vpack.c.bf16 %v428_v41, %v3303_v29 }
 0x222   :  { %v3316_v51 = vsel %vm670_vm1, %v664_v39, %v665_v44  ;;  %v3324_v53 = vsel %vm687_vm2, %v681_v40, %v682_v45 }
 0x223   :  { %v2178_v55 = vpop.f32.mrb[4].mxu0  ;;  %2180 = vmatprep.subr.bf16.mxu1 %v492_v50  ;;  %v3328_v56 = vsel %vm687_vm2, %v680_v49, %v681_v40  ;;  %v3332_v57 = vsel %vm670_vm1, %v662_v43, %v663_v48  ;;  %v3336_v58 = vsel %vm670_vm1, %v663_v48, %v664_v39  ;;  %v3340_v59 = vsel %vm687_vm2, %v679_v47, %v680_v49 }
 0x224   :  { %v433_v60 = vmax.f32 %v2178_v55, 0.0  ;;  %v412_v61 = vpop.f32.mrb[5].mxu0  ;;  %2181 = vmatpush3.bf16.msra.mxu1 %v492_v50  ;;  %v714_v62 = vsel %vm3295_vm3, %v3316_v51, %v3328_v56  ;;  %v713_v0 = vsel %vm3299_vm4, %v3336_v58, %v3340_v59 }
 0x225   :  { %v431_v1 = vmax.f32 %v412_v61, 0.0  ;;  %v2179_v2 = vpop.f32.mrb[6].mxu0  ;;  %2182 = vmatprep.subr.bf16.mxu1 %v493_v46 }
 0x226   :  { %v668_v6 = vrot.slane %v433_v60, 1  ;;  %v434_v7 = vmax.f32 %v2179_v2, 0.0  ;;  %v3366_v8 = vpack.c.bf16 %v2179_v2, %v2178_v55  ;;  %v415_v9 = vpop.f32.mrb[7].mxu0  ;;  %v685_v17 = vrot.slane %v433_v60, 7  ;;  %v3446_v55 = vld [vmem:[#allocation11] sm:$0xff]   ;;  %v3463_v2 = vld [vmem:[#allocation8 + $0x18] sm:$0xff]  }
 0x227   :  { %v666_v11 = vrot.slane %v431_v1, 1  ;;  %v683_v13 = vrot.slane %v431_v1, 7  ;;  %v432_v15 = vmax.f32 %v415_v9, 0.0  ;;  %v3372_v16 = vpack.c.bf16 %v415_v9, %v412_v61  ;;  %v3453_v61 = vld [vmem:[#allocation11 + $0x8] sm:$0xff]  }
 0x228   :  { %v669_v18 = vrot.slane %v434_v7, 1  ;;  %v686_v19 = vrot.slane %v434_v7, 7  ;;  %2183 = vmatpush3.bf16.msra.mxu1 %v493_v46  ;;  %v495_v20 = vpack.c.bf16 %v434_v7, %v433_v60  ;;  %v3450_v60 = vld [vmem:[#allocation8 + $0x10] sm:$0xff]   ;;  %v3473_v7 = vld [vmem:[#allocation11 + $0x20] sm:$0xff]   ;;  %v3477_v9 = vld [vmem:[#allocation11 + $0x28] sm:$0xff]  }
 0x229   :  { %v667_v21 = vrot.slane %v432_v15, 1  ;;  %v684_v22 = vrot.slane %v432_v15, 7  ;;  %v494_v23 = vpack.c.bf16 %v432_v15, %v431_v1  ;;  %v3376_v24 = vsel %vm670_vm1, %v665_v44, %v666_v11  ;;  %v3438_v44 = vld [vmem:[#allocation7 + $0x8] sm:$0xff]   ;;  %v3461_v1 = vld [vmem:[#allocation11 + $0x10] sm:$0xff]  }
 0x22a   :  { %v3380_v25 = vsel %vm687_vm2, %v686_v19, %v679_v47  ;;  %v715_v27 = vsel %vm3318_vm5, %v3376_v24, %v3324_v53  ;;  %v3388_v29 = vsel %vm670_vm1, %v668_v6, %v669_v18  ;;  %v3392_v30 = vsel %vm687_vm2, %v682_v45, %v683_v13  ;;  %v3442_v45 = vld [vmem:[#allocation8] sm:$0xff]  }
 0x22b   :  { %2184 = vmatprep.subr.bf16.mxu1 %v494_v23  ;;  %v712_v31 = vsel %vm3346_vm6, %v3332_v57, %v3380_v25  ;;  %v3400_v32 = vsel %vm687_vm2, %v684_v22, %v685_v17  ;;  %v3404_v33 = vsel %vm670_vm1, %v666_v11, %v667_v21  ;;  %v3408_v34 = vsel %vm670_vm1, %v669_v18, %v662_v43  ;;  %v3448_v57 = vld [vmem:[#allocation8 + $0x8] sm:$0xff]   ;;  %v3482_v11 = vld [vmem:[#allocation11 + $0x30] sm:$0xff]  }
 0x22c   :  { %2185 = vmatpush3.bf16.msra.mxu1 %v494_v23  ;;  %v718_v36 = vsel %vm3354_vm7, %v3388_v29, %v3400_v32  ;;  %v716_v37 = vsel %vm3358_vm8, %v3404_v33, %v3392_v30  ;;  %v3420_v38 = vsel %vm687_vm2, %v685_v17, %v686_v19  ;;  %v3424_v39 = vsel %vm670_vm1, %v667_v21, %v668_v6  ;;  %v3467_v6 = vld [vmem:[#allocation11 + $0x18] sm:$0xff]  }
 0x22d   :  { %2186 = vmatprep.subr.bf16.mxu1 %v495_v20  ;;  %v719_v40 = vsel %vm3362_vm9, %v3408_v34, %v3420_v38  ;;  %v3432_v41 = vsel %vm687_vm2, %v683_v13, %v684_v22  ;;  %v3486_v13 = vld [vmem:[#allocation11 + $0x38] sm:$0xff]   ;;  %v847_v30 = vunpack.c.l.bf16 %v3306_v35  ;;  %v845_v32 = vunpack.c.l.bf16 %v3309_v42 }
 0x22e   :  { %v717_v43 = vsel %vm3368_vm10, %v3424_v39, %v3432_v41  ;;  %v846_v39 = vunpack.c.h.bf16 %v3309_v42 }
 0x230   :  { %2187 = vmatpush3.bf16.msra.mxu1 %v495_v20 }
 0x233   :  { %2189 = vmatmul.mubr.msk.bf16.vlgmr.msra.gmra.mrb[0].mxu1 %vm506_vm0, %v3438_v44 }
 0x234   :  { %2196 = vmatprep.mubr.msk.bf16.mxu1 %vm584_vm11, %v3442_v45 }
 0x306   :  { %v2190_v46 = vpop.f32.mrb[0].mxu1 }
 0x307   :  { %v547_v47 = vpop.f32.mrb[1].mxu1 }
 0x308   :  { %v2191_v48 = vpop.f32.mrb[2].mxu1 }
 0x309   :  { %v563_v49 = vpack.c.bf16 %v2191_v48, %v2190_v46  ;;  %v550_v50 = vpop.f32.mrb[3].mxu1 }
 0x30a   :  { %v562_v54 = vpack.c.bf16 %v550_v50, %v547_v47  ;;  %v849_v50 = vunpack.c.l.bf16 %v3372_v16 }
 0x30c   :  { %2192 = vmatprep.subr.bf16.mxu1 %v562_v54 }
 0x30d   :  { %2193 = vmatpush3.bf16.msra.mxu1 %v562_v54 }
 0x30e   :  { %2194 = vmatprep.subr.bf16.mxu1 %v563_v49 }
 0x311   :  { %2195 = vmatpush3.bf16.msra.mxu1 %v563_v49  ;;  %v851_v49 = vunpack.c.l.bf16 %v3366_v8 }
 0x312   :  { %2204 = vmatprep.subr.bf16.mxu1 %v3446_v55 }
 0x314   :  { %2197 = vmatmul.mubr.msk.bf16.vlgmr.msra.gmra.mrb[4].mxu1 %vm584_vm11, %v3448_v57 }
 0x315   :  { %2200 = vmatprep.mubr.msk.bf16.mxu1 %vm584_vm11, %v3450_v60  ;;  %2205 = vmatpush3.bf16.msra.mxu1 %v3446_v55 }
 0x316   :  { %2206 = vmatprep.subr.bf16.mxu1 %v3453_v61 }
 0x319   :  { %2207 = vmatpush3.bf16.msra.mxu1 %v3453_v61 }
 0x31a   :  { %2208 = vmatprep.subr.bf16.mxu1 %v3461_v1 }
 0x31c   :  { %2201 = vmatmul.mubr.msk.bf16.gmra.mrb[8].mxu1 %vm584_vm11, %v3463_v2 }
 0x31d   :  { %2209 = vmatpush3.bf16.msra.mxu1 %v3461_v1 }
 0x31e   :  { %2210 = vmatprep.subr.bf16.mxu1 %v3467_v6 }
 0x321   :  { %2211 = vmatpush3.bf16.msra.mxu1 %v3467_v6 }
 0x322   :  { %2212 = vmatprep.subr.bf16.mxu1 %v3473_v7 }
 0x325   :  { %2213 = vmatpush3.bf16.msra.mxu1 %v3473_v7 }
 0x326   :  { %2214 = vmatprep.subr.bf16.mxu1 %v3477_v9 }
 0x329   :  { %2215 = vmatpush3.bf16.msra.mxu1 %v3477_v9 }
 0x32a   :  { %2216 = vmatprep.subr.bf16.mxu1 %v3482_v11 }
 0x32d   :  { %2217 = vmatpush3.bf16.msra.mxu1 %v3482_v11 }
 0x32e   :  { %2218 = vmatprep.subr.bf16.mxu1 %v3486_v13 }
 0x331   :  { %2219 = vmatpush3.bf16.msra.mxu1 %v3486_v13 }
 0x3e7   :  { %v2198_v15 = vpop.f32.mrb[4].mxu1 }
 0x3e8   :  { %v722_v17 = vsub.f32 %v2198_v15, %v714_v62  ;;  %v631_v18 = vpop.f32.mrb[5].mxu1 }
 0x3e9   :  { %v720_v19 = vsub.f32 %v631_v18, %v712_v31  ;;  %v2199_v20 = vpop.f32.mrb[6].mxu1  ;;  %v3751_v18 = vunpack.c.h.bf16 %v3372_v16 }
 0x3ea   :  { %v723_v21 = vsub.f32 %v2199_v20, %v715_v27  ;;  %v634_v22 = vpop.f32.mrb[7].mxu1 }
 0x3eb   :  { %v721_v23 = vsub.f32 %v634_v22, %v713_v0 }
 0x3ec   :  { %v729_v25 = vpack.c.bf16 %v723_v21, %v722_v17  ;;  %v852_v17 = vunpack.c.h.bf16 %v3366_v8  ;;  %v2449_v8 = vld [vmem:[#allocation14 + $0x8] sm:$0xff]  }
 0x3ed   :  { %v728_v46 = vpack.c.bf16 %v721_v23, %v720_v19 }
 0x3ef   :  { %v2202_v51 = vpop.f32.mrb[8].mxu1  ;;  %2220 = vmatprep.mubr.bf16.mxu1 %v728_v46 }
 0x3f0   :  { %v726_v56 = vsub.f32 %v2202_v51, %v718_v36  ;;  %v647_v62 = vpop.f32.mrb[9].mxu1  ;;  %2221 = vmatmul.mubr.bf16.vlgmr.msra.gmra.mrb[12].mxu1 %v729_v25  ;;  %v848_v36 = vunpack.c.h.bf16 %v3306_v35 }
 0x3f1   :  { %v724_v53 = vsub.f32 %v647_v62, %v716_v37  ;;  %v2203_v58 = vpop.f32.mrb[10].mxu1 }
 0x3f2   :  { %v727_v59 = vsub.f32 %v2203_v58, %v719_v40  ;;  %v650_v0 = vpop.f32.mrb[11].mxu1 }
 0x3f3   :  { %v725_v24 = vsub.f32 %v650_v0, %v717_v43 }
 0x3f4   :  { %v731_v27 = vpack.c.bf16 %v727_v59, %v726_v56 }
 0x3f5   :  { %v730_v29 = vpack.c.bf16 %v725_v24, %v724_v53 }
 0x3f7   :  { %2224 = vmatprep.mubr.bf16.mxu1 %v730_v29 }
 0x3f8   :  { %2225 = vmatmul.mubr.bf16.gmra.mrb[16].mxu1 %v731_v27 }
 0x3f9   :  { %2284 = vmatprep.mubr.msk.bf16.mxu1 %vm506_vm0, %v3279_v12 }
 0x4c3   :  { %v2222_v31 = vpop.f32.mrb[12].mxu1 }
 0x4c4   :  { %v855_v33 = vadd.f32 %v2222_v31, %v847_v30  ;;  %v814_v34 = vpop.f32.mrb[13].mxu1 }
 0x4c5   :  { %v853_v37 = vadd.f32 %v845_v32, %v814_v34  ;;  %v2223_v38 = vpop.f32.mrb[14].mxu1 }
 0x4c6   :  { %v863_v40 = vmax.f32 %v855_v33, 0.0  ;;  %v856_v12 = vadd.f32 %v2223_v38, %v848_v36  ;;  %v817_v41 = vpop.f32.mrb[15].mxu1 }
 0x4c7   :  { %v3537_v43 = vmax.f32 %v853_v37, 0.0  ;;  %v854_v47 = vadd.f32 %v846_v39, %v817_v41 }
 0x4c8   :  { %v864_v48 = vmax.f32 %v856_v12, 0.0  ;;  %v991_v54 = vrot.slane %v863_v40, 1  ;;  %v1007_v19 = vrot.slane %v863_v40, 7 }
 0x4c9   :  { %v862_v15 = vmax.f32 %v854_v47, 0.0  ;;  %v989_v23 = vrot.slane %v3537_v43, 1  ;;  %v1005_v62 = vrot.slane %v3537_v43, 7 }
 0x4ca   :  { %v992_v20 = vrot.slane %v864_v48, 1  ;;  %v1008_v21 = vrot.slane %v864_v48, 7  ;;  %v870_v22 = vpack.c.bf16 %v864_v48, %v863_v40 }
 0x4cb   :  { %v990_v25 = vrot.slane %v862_v15, 1  ;;  %v1006_v46 = vrot.slane %v862_v15, 7  ;;  %v2226_v51 = vpop.f32.mrb[16].mxu1  ;;  %v869_v56 = vpack.c.bf16 %v862_v15, %v3537_v43 }
 0x4cc   :  { %v859_v53 = vadd.f32 %v2226_v51, %v851_v49  ;;  %v830_v58 = vpop.f32.mrb[17].mxu1  ;;  %v3552_v59 = vsel %vm670_vm1, %v991_v54, %v992_v20  ;;  %v3556_v0 = vsel %vm687_vm2, %v1007_v19, %v1008_v21 }
 0x4cd   :  { %v857_v24 = vadd.f32 %v849_v50, %v830_v58  ;;  %v2227_v27 = vpop.f32.mrb[18].mxu1  ;;  %2228 = vmatprep.subr.bf16.mxu0 %v869_v56  ;;  %v3562_v29 = vsel %vm687_vm2, %v1006_v46, %v1007_v19  ;;  %v3566_v31 = vsel %vm670_vm1, %v989_v23, %v990_v25  ;;  %v3570_v33 = vsel %vm670_vm1, %v990_v25, %v991_v54 }
 0x4ce   :  { %v867_v34 = vmax.f32 %v859_v53, 0.0  ;;  %v860_v37 = vadd.f32 %v2227_v27, %v852_v17  ;;  %v833_v38 = vpop.f32.mrb[19].mxu1  ;;  %2229 = vmatpush3.bf16.msra.mxu0 %v869_v56  ;;  %v1023_v40 = vsel %vm3295_vm3, %v3552_v59, %v3562_v29  ;;  %v3580_v12 = vsel %vm687_vm2, %v1005_v62, %v1006_v46 }
 0x4cf   :  { %v865_v41 = vmax.f32 %v857_v24, 0.0  ;;  %v858_v43 = vadd.f32 %v3751_v18, %v833_v38  ;;  %2230 = vmatprep.subr.bf16.mxu0 %v870_v22  ;;  %v1022_v47 = vsel %vm3299_vm4, %v3570_v33, %v3580_v12 }
 0x4d0   :  { %v868_v48 = vmax.f32 %v860_v37, 0.0  ;;  %v995_v54 = vrot.slane %v867_v34, 1  ;;  %v1011_v51 = vrot.slane %v867_v34, 7 }
 0x4d1   :  { %v993_v15 = vrot.slane %v865_v41, 1  ;;  %v1009_v19 = vrot.slane %v865_v41, 7  ;;  %v866_v25 = vmax.f32 %v858_v43, 0.0 }
 0x4d2   :  { %v996_v56 = vrot.slane %v868_v48, 1  ;;  %v1012_v53 = vrot.slane %v868_v48, 7  ;;  %2231 = vmatpush3.bf16.msra.mxu0 %v870_v22  ;;  %v872_v46 = vpack.c.bf16 %v868_v48, %v867_v34 }
 0x4d3   :  { %v994_v58 = vrot.slane %v866_v25, 1  ;;  %v1010_v24 = vrot.slane %v866_v25, 7  ;;  %v871_v27 = vpack.c.bf16 %v866_v25, %v865_v41  ;;  %v1000_v38 = vsel %vm670_vm1, %v992_v20, %v993_v15 }
 0x4d4   :  { %v1020_v18 = vsel %vm687_vm2, %v1012_v53, %v1005_v62  ;;  %v1024_v37 = vsel %vm3318_vm5, %v1000_v38, %v3556_v0  ;;  %v997_v43 = vsel %vm670_vm1, %v995_v54, %v996_v56  ;;  %v3599_v22 = vsel %vm687_vm2, %v1008_v21, %v1009_v19 }
 0x4d5   :  { %2232 = vmatprep.subr.bf16.mxu0 %v871_v27  ;;  %v1021_v34 = vsel %vm3346_vm6, %v3566_v31, %v1020_v18  ;;  %v1014_v20 = vsel %vm687_vm2, %v1010_v24, %v1011_v51  ;;  %v999_v62 = vsel %vm670_vm1, %v993_v15, %v994_v58  ;;  %v1004_v52 = vsel %vm670_vm1, %v996_v56, %v989_v23 }
 0x4d6   :  { %2233 = vmatpush3.bf16.msra.mxu0 %v871_v27  ;;  %v1027_v0 = vsel %vm3354_vm7, %v997_v43, %v1014_v20  ;;  %v1025_v21 = vsel %vm3358_vm8, %v999_v62, %v3599_v22  ;;  %v1013_v63 = vsel %vm687_vm2, %v1011_v51, %v1012_v53  ;;  %v998_v18 = vsel %vm670_vm1, %v994_v58, %v995_v54 }
 0x4d7   :  { %2234 = vmatprep.subr.bf16.mxu0 %v872_v46  ;;  %v1028_v31 = vsel %vm3362_vm9, %v1004_v52, %v1013_v63  ;;  %v1015_v23 = vsel %vm687_vm2, %v1009_v19, %v1010_v24 }
 0x4d8   :  { %v1026_v3 = vsel %vm3368_vm10, %v998_v18, %v1015_v23  ;;  %v2452_v18 = vld [vmem:[#allocation14 + $0x20] sm:$0xff]   ;;  %v2454_v23 = vld [vmem:[#allocation14 + $0x30] sm:$0xff]  }
 0x4da   :  { %2235 = vmatpush3.bf16.msra.mxu0 %v872_v46 }
 0x4dd   :  { %2237 = vmatmul.mubr.msk.bf16.vlgmr.msra.gmra.mrb[8].mxu0 %vm506_vm0, %v3438_v44 }
 0x4de   :  { %2244 = vmatprep.mubr.msk.bf16.mxu0 %vm584_vm11, %v3442_v45 }
 0x5b0   :  { %v2238_v4 = vpop.f32.mrb[8].mxu0 }
 0x5b1   :  { %v907_v41 = vpop.f32.mrb[9].mxu0 }
 0x5b2   :  { %v2239_v48 = vpop.f32.mrb[10].mxu0 }
 0x5b3   :  { %v923_v54 = vpack.c.bf16 %v2239_v48, %v2238_v4  ;;  %v910_v15 = vpop.f32.mrb[11].mxu0  ;;  %v2466_v4 = vld [vmem:[#allocation17] sm:$0xff]   ;;  %v2468_v48 = vld [vmem:[#allocation17 + $0x10] sm:$0xff]  }
 0x5b4   :  { %v922_v5 = vpack.c.bf16 %v910_v15, %v907_v41  ;;  %v2467_v41 = vld [vmem:[#allocation17 + $0x8] sm:$0xff]   ;;  %v2470_v15 = vld [vmem:[#allocation17 + $0x20] sm:$0xff]  }
 0x5b6   :  { %2240 = vmatprep.subr.bf16.mxu0 %v922_v5 }
 0x5b7   :  { %2241 = vmatpush3.bf16.msra.mxu0 %v922_v5  ;;  %v2471_v5 = vld [vmem:[#allocation17 + $0x28] sm:$0xff]  }
 0x5b8   :  { %2242 = vmatprep.subr.bf16.mxu0 %v923_v54 }
 0x5bb   :  { %2243 = vmatpush3.bf16.msra.mxu0 %v923_v54  ;;  %v2469_v54 = vld [vmem:[#allocation17 + $0x18] sm:$0xff]  }
 0x5bc   :  { %2252 = vmatprep.subr.bf16.mxu0 %v3446_v55 }
 0x5be   :  { %2245 = vmatmul.mubr.msk.bf16.vlgmr.msra.gmra.mrb[12].mxu0 %vm584_vm11, %v3448_v57 }
 0x5bf   :  { %2248 = vmatprep.mubr.msk.bf16.mxu0 %vm584_vm11, %v3450_v60  ;;  %2253 = vmatpush3.bf16.msra.mxu0 %v3446_v55 }
 0x5c0   :  { %2254 = vmatprep.subr.bf16.mxu0 %v3453_v61 }
 0x5c3   :  { %2255 = vmatpush3.bf16.msra.mxu0 %v3453_v61 }
 0x5c4   :  { %2256 = vmatprep.subr.bf16.mxu0 %v3461_v1 }
 0x5c6   :  { %2249 = vmatmul.mubr.msk.bf16.gmra.mrb[16].mxu0 %vm584_vm11, %v3463_v2 }
 0x5c7   :  { %2257 = vmatpush3.bf16.msra.mxu0 %v3461_v1 }
 0x5c8   :  { %2258 = vmatprep.subr.bf16.mxu0 %v3467_v6 }
 0x5cb   :  { %2259 = vmatpush3.bf16.msra.mxu0 %v3467_v6 }
 0x5cc   :  { %2260 = vmatprep.subr.bf16.mxu0 %v3473_v7 }
 0x5cf   :  { %2261 = vmatpush3.bf16.msra.mxu0 %v3473_v7 }
 0x5d0   :  { %2262 = vmatprep.subr.bf16.mxu0 %v3477_v9 }
 0x5d3   :  { %2263 = vmatpush3.bf16.msra.mxu0 %v3477_v9 }
 0x5d4   :  { %2264 = vmatprep.subr.bf16.mxu0 %v3482_v11 }
 0x5d7   :  { %2265 = vmatpush3.bf16.msra.mxu0 %v3482_v11 }
 0x5d8   :  { %2266 = vmatprep.subr.bf16.mxu0 %v3486_v13 }
 0x5db   :  { %2267 = vmatpush3.bf16.msra.mxu0 %v3486_v13 }
 0x5dc   :  { %2328 = vmatprep.subr.bf16.mxu0 %v2466_v4 }
 0x691   :  { %v2246_v14 = vpop.f32.mrb[12].mxu0 }
 0x692   :  { %v1031_v10 = vsub.f32 %v2246_v14, %v1023_v40  ;;  %v958_v45 = vpop.f32.mrb[13].mxu0  ;;  %v2472_v14 = vld [vmem:[#allocation17 + $0x30] sm:$0xff]  }
 0x693   :  { %v1029_v55 = vsub.f32 %v958_v45, %v1021_v34  ;;  %v2247_v57 = vpop.f32.mrb[14].mxu0 }
 0x694   :  { %v1032_v60 = vsub.f32 %v2247_v57, %v1024_v37  ;;  %v961_v61 = vpop.f32.mrb[15].mxu0 }
 0x695   :  { %v1030_v1 = vsub.f32 %v961_v61, %v1022_v47 }
 0x696   :  { %v1038_v2 = vpack.c.bf16 %v1032_v60, %v1031_v10 }
 0x697   :  { %v1037_v6 = vpack.c.bf16 %v1030_v1, %v1029_v55  ;;  %v2464_v1 = vld [vmem:[#allocation5] sm:$0xff]  }
 0x699   :  { %v2250_v7 = vpop.f32.mrb[16].mxu0  ;;  %2268 = vmatprep.mubr.bf16.mxu0 %v1037_v6  ;;  %v2458_v6 = vld [vmem:[#allocation13 + $0x10] sm:$0xff]  }
 0x69a   :  { %v1035_v26 = vsub.f32 %v2250_v7, %v1027_v0  ;;  %v974_v9 = vpop.f32.mrb[17].mxu0  ;;  %2269 = vmatmul.mubr.bf16.vlgmr.msra.gmra.mrb[20].mxu0 %v1038_v2  ;;  %v2457_v2 = vld [vmem:[#allocation13 + $0x8] sm:$0xff]   ;;  %v2459_v7 = vld [vmem:[#allocation13 + $0x18] sm:$0xff]  }
 0x69b   :  { %v1033_v11 = vsub.f32 %v974_v9, %v1025_v21  ;;  %v2251_v13 = vpop.f32.mrb[18].mxu0  ;;  %2329 = vmatpush3.bf16.msra.mxu0 %v2466_v4  ;;  %v2461_v9 = vld [vmem:[#allocation13 + $0x28] sm:$0xff]  }
 0x69c   :  { %v1036_v59 = vsub.f32 %v2251_v13, %v1028_v31  ;;  %v977_v29 = vpop.f32.mrb[19].mxu0  ;;  %v2453_v31 = vld [vmem:[#allocation14 + $0x28] sm:$0xff]   ;;  %2330 = vmatprep.subr.bf16.mxu0 %v2467_v41  ;;  %v2463_v13 = vld [vmem:[#allocation13 + $0x38] sm:$0xff]  }
 0x69d   :  { %v1034_v40 = vsub.f32 %v977_v29, %v1026_v3  ;;  %v2455_v3 = vld [vmem:[#allocation14 + $0x38] sm:$0xff]  }
 0x69e   :  { %v1040_v19 = vpack.c.bf16 %v1036_v59, %v1035_v26  ;;  %v2460_v26 = vld [vmem:[#allocation13 + $0x20] sm:$0xff]   ;;  %v2465_v59 = vld [vmem:[#allocation5 + $0x8] sm:$0xff]  }
 0x69f   :  { %v1039_v25 = vpack.c.bf16 %v1034_v40, %v1033_v11  ;;  %2331 = vmatpush3.bf16.msra.mxu0 %v2467_v41  ;;  %v2462_v11 = vld [vmem:[#allocation13 + $0x30] sm:$0xff]   ;;  %v2473_v29 = vld [vmem:[#allocation17 + $0x38] sm:$0xff]  }
 0x6a0   :  { %2332 = vmatprep.subr.bf16.mxu0 %v2468_v48  ;;  %v2016_v40 = vld [vmem:[#allocation16] ss:$0 sm:$0xff] }
 0x6a1   :  { %2272 = vmatprep.mubr.bf16.mxu0 %v1039_v25 }
 0x6a2   :  { %2273 = vmatmul.mubr.bf16.gmra.mrb[24].mxu0 %v1040_v19 }
 0x6a3   :  { %2333 = vmatpush3.bf16.msra.mxu0 %v2468_v48 }
 0x6a4   :  { %2334 = vmatprep.subr.bf16.mxu0 %v2469_v54 }
 0x6a7   :  { %2335 = vmatpush3.bf16.msra.mxu0 %v2469_v54 }
 0x6a8   :  { %2336 = vmatprep.subr.bf16.mxu0 %v2470_v15 }
 0x6ab   :  { %2337 = vmatpush3.bf16.msra.mxu0 %v2470_v15 }
 0x6ac   :  { %2338 = vmatprep.subr.bf16.mxu0 %v2471_v5 }
 0x6af   :  { %2339 = vmatpush3.bf16.msra.mxu0 %v2471_v5 }
 0x6b0   :  { %2340 = vmatprep.subr.bf16.mxu0 %v2472_v14 }
 0x6b3   :  { %2341 = vmatpush3.bf16.msra.mxu0 %v2472_v14 }
 0x6b4   :  { %2342 = vmatprep.subr.bf16.mxu0 %v2473_v29 }
 0x6b7   :  { %2343 = vmatpush3.bf16.msra.mxu0 %v2473_v29  ;;  %v1913_v29 = vld [vmem:[#allocation26] sm:$0xff] }
 0x76d   :  { %v2270_v28 = vpop.f32.mrb[20].mxu0 }
 0x76e   :  { %v1108_v33 = vadd.f32 %v2270_v28, %v847_v30  ;;  %v1075_v12 = vpop.f32.mrb[21].mxu0 }
 0x76f   :  { %v1106_v47 = vadd.f32 %v1075_v12, %v845_v32  ;;  %v2271_v51 = vpop.f32.mrb[22].mxu0 }
 0x770   :  { %v1109_v56 = vadd.f32 %v2271_v51, %v848_v36  ;;  %v1078_v53 = vpop.f32.mrb[23].mxu0  ;;  %v1116_v58 = vmax.f32 %v1108_v33, 0.0 }
 0x771   :  { %v1107_v46 = vadd.f32 %v1078_v53, %v846_v39  ;;  %v1114_v27 = vmax.f32 %v1106_v47, 0.0  ;;  %v3770_v39 = vunpack.c.h.bf16 %v3372_v16  ;;  %v2450_v16 = vld [vmem:[#allocation14 + $0x10] sm:$0xff]  }
 0x772   :  { %v1117_v24 = vmax.f32 %v1109_v56, 0.0 }
 0x773   :  { %v1115_v38 = vmax.f32 %v1107_v46, 0.0 }
 0x774   :  { %v1123_v37 = vpack.c.bf16 %v1117_v24, %v1116_v58 }
 0x775   :  { %v1122_v43 = vpack.c.bf16 %v1115_v38, %v1114_v27  ;;  %v2274_v22 = vpop.f32.mrb[24].mxu0 }
 0x776   :  { %v1112_v30 = vadd.f32 %v2274_v22, %v851_v49  ;;  %v1091_v34 = vpop.f32.mrb[25].mxu0  ;;  %v2917_v22 = vmov 0  }
 0x777   :  { %v1110_v32 = vadd.f32 %v1091_v34, %v849_v50  ;;  %v2275_v35 = vpop.f32.mrb[26].mxu0  ;;  %2276 = vmatprep.subr.bf16.mxu1 %v1122_v43  ;;  %v2448_v50 = vld [vmem:[#allocation14] sm:$0xff]   ;;  %2420 = vset.pattern.permute.xlu0 %v2917_v22 }
 0x778   :  { %v1113_v42 = vadd.f32 %v2275_v35, %v852_v17  ;;  %v1094_v36 = vpop.f32.mrb[27].mxu0  ;;  %2277 = vmatpush3.bf16.msra.mxu1 %v1122_v43  ;;  %v1120_v62 = vmax.f32 %v1112_v30, 0.0  ;;  %v2451_v17 = vld [vmem:[#allocation14 + $0x18] sm:$0xff]   ;;  %2421 = vset.pattern.permute.xlu1 %v2917_v22  ;;  %v1601_v30 = vld [vmem:[#allocation22 + $0x8] sm:$0xff] }
 0x779   :  { %v1111_v20 = vadd.f32 %v1094_v36, %v3770_v39  ;;  %2278 = vmatprep.subr.bf16.mxu1 %v1123_v37  ;;  %v1118_v0 = vmax.f32 %v1110_v32, 0.0  ;;  %v1602_v43 = vld [vmem:[#allocation22 + $0x10] sm:$0xff]  ;;  %v1603_v34 = vld [vmem:[#allocation22 + $0x18] sm:$0xff] }
 0x77a   :  { %v1121_v52 = vmax.f32 %v1113_v42, 0.0  ;;  %1612 = vperm.xlu1 %2421, %v1602_v43   ;;  %v2479_v43 = vld [vmem:[#allocation19 + $0x28] sm:$0xff]   ;;  %v2480_v22 = vld [vmem:[#allocation19 + $0x30] sm:$0xff]  }
 0x77b   :  { %v1119_v21 = vmax.f32 %v1111_v20, 0.0 }
 0x77c   :  { %v1125_v49 = vpack.c.bf16 %v1121_v52, %v1120_v62  ;;  %2279 = vmatpush3.bf16.msra.mxu1 %v1123_v37  ;;  %v1600_v37 = vld [vmem:[#allocation22] sm:$0xff] }
 0x77d   :  { %v1124_v63 = vpack.c.bf16 %v1119_v21, %v1118_v0  ;;  %1606 = vperm.xlu0 %2420, %v1600_v37   ;;  %v2025_v52 = vld [vmem:[#allocation23] ss:$0 sm:$0xff] }
 0x77e   :  { %1615 = vperm.xlu1 %2421, %v1603_v34   ;;  %v2478_v37 = vld [vmem:[#allocation19 + $0x20] sm:$0xff]  }
 0x77f   :  { %2280 = vmatprep.subr.bf16.mxu1 %v1124_v63 }
 0x780   :  { %2281 = vmatpush3.bf16.msra.mxu1 %v1124_v63 }
 0x781   :  { %2282 = vmatprep.subr.bf16.mxu1 %v1125_v49  ;;  %1609 = vperm.xlu0 %2420, %v1601_v30  }
 0x784   :  { %2283 = vmatpush3.bf16.msra.mxu1 %v1125_v49 }
 0x785   :  { %2288 = vmatprep.subr.bf16.mxu1 %v2448_v50 }
 0x787   :  { %2285 = vmatmul.mubr.msk.bf16.vlgmr.msra.gmra.mrb[20].mxu1 %vm506_vm0, %v3438_v44  ;;  %v2456_v44 = vld [vmem:[#allocation13] sm:$0xff]   ;;  %vm2919_vm0 = vmmov 0  }
 0x788   :  { %2289 = vmatpush3.bf16.msra.mxu1 %v2448_v50 }
 0x789   :  { %2290 = vmatprep.subr.bf16.mxu1 %v2449_v8 }
 0x78c   :  { %2291 = vmatpush3.bf16.msra.mxu1 %v2449_v8 }
 0x78d   :  { %2292 = vmatprep.subr.bf16.mxu1 %v2450_v16 }
 0x790   :  { %2293 = vmatpush3.bf16.msra.mxu1 %v2450_v16 }
 0x791   :  { %2294 = vmatprep.subr.bf16.mxu1 %v2451_v17 }
 0x794   :  { %2295 = vmatpush3.bf16.msra.mxu1 %v2451_v17 }
 0x795   :  { %2296 = vmatprep.subr.bf16.mxu1 %v2452_v18 }
 0x798   :  { %2297 = vmatpush3.bf16.msra.mxu1 %v2452_v18 }
 0x799   :  { %2298 = vmatprep.subr.bf16.mxu1 %v2453_v31 }
 0x79c   :  { %2299 = vmatpush3.bf16.msra.mxu1 %v2453_v31 }
 0x79d   :  { %2300 = vmatprep.subr.bf16.mxu1 %v2454_v23 }
 0x7a0   :  { %2301 = vmatpush3.bf16.msra.mxu1 %v2454_v23 }
 0x7a1   :  { %2302 = vmatprep.subr.bf16.mxu1 %v2455_v3 }
 0x7a4   :  { %2303 = vmatpush3.bf16.msra.mxu1 %v2455_v3 }
 0x7a5   :  { %2308 = vmatprep.subr.bf16.mxu1 %v2456_v44 }
 0x7f9   :  { %v1613_v0 = vpop.permute.xlu1 %1612 }
 0x7fa   :  { %vm1623_vm13 = vcmp.eq.s32.totalorder %v1613_v0, %v2025_v52 }
 0x7fc   :  { %v1607_v62 = vpop.permute.xlu0 %1606 }
 0x7fd   :  { %vm1621_vm12 = vcmp.eq.s32.totalorder %v1607_v62, %v2025_v52  ;;  %v1616_v50 = vpop.permute.xlu1 %1615 }
 0x7fe   :  { %vm1624_vm15 = vcmp.eq.s32.totalorder %v1616_v50, %v2025_v52  ;;  %v2481_v50 = vld [vmem:[#allocation19 + $0x38] sm:$0xff]  }
 0x800   :  { %v1610_v21 = vpop.permute.xlu0 %1609 }
 0x801   :  { %vm1622_vm14 = vcmp.eq.s32.totalorder %v1610_v21, %v2025_v52 }
 0x85a   :  { %v2286_v10 = vpop.f32.mrb[20].mxu1 }
 0x85b   :  { %v1160_v45 = vpop.f32.mrb[21].mxu1 }
 0x85c   :  { %v2287_v55 = vpop.f32.mrb[22].mxu1 }
 0x85d   :  { %v1196_v57 = vpack.c.bf16 %v2287_v55, %v2286_v10  ;;  %v1163_v60 = vpop.f32.mrb[23].mxu1 }
 0x85e   :  { %v1195_v61 = vpack.c.bf16 %v1163_v60, %v1160_v45 }
 0x860   :  { %2304 = vmatprep.mubr.bf16.mxu1 %v1195_v61 }
 0x861   :  { %2305 = vmatmul.mubr.bf16.vlgmr.msra.gmra.mrb[24].mxu1 %v1196_v57 }
 0x862   :  { %2309 = vmatpush3.bf16.msra.mxu1 %v2456_v44  ;;  %2324 = vmatprep.mubr.bf16.mxu1 %v2464_v1 }
 0x863   :  { %2310 = vmatprep.subr.bf16.mxu1 %v2457_v2 }
 0x866   :  { %2311 = vmatpush3.bf16.msra.mxu1 %v2457_v2 }
 0x867   :  { %2312 = vmatprep.subr.bf16.mxu1 %v2458_v6 }
 0x86a   :  { %2313 = vmatpush3.bf16.msra.mxu1 %v2458_v6 }
 0x86b   :  { %2314 = vmatprep.subr.bf16.mxu1 %v2459_v7 }
 0x86e   :  { %2315 = vmatpush3.bf16.msra.mxu1 %v2459_v7 }
 0x86f   :  { %2316 = vmatprep.subr.bf16.mxu1 %v2460_v26 }
 0x872   :  { %2317 = vmatpush3.bf16.msra.mxu1 %v2460_v26 }
 0x873   :  { %2318 = vmatprep.subr.bf16.mxu1 %v2461_v9 }
 0x876   :  { %2319 = vmatpush3.bf16.msra.mxu1 %v2461_v9 }
 0x877   :  { %2320 = vmatprep.subr.bf16.mxu1 %v2462_v11 }
 0x87a   :  { %2321 = vmatpush3.bf16.msra.mxu1 %v2462_v11 }
 0x87b   :  { %2322 = vmatprep.subr.bf16.mxu1 %v2463_v13 }
 0x87e   :  { %2323 = vmatpush3.bf16.msra.mxu1 %v2463_v13 }
 0x881   :  { %2325 = vmatmul.mubr.bf16.vlgmr.msra.gmra.mrb[24].mxu1 %v2465_v59 }
 0x954   :  { %v2326_v19 = vpop.f32.mrb[24].mxu1 }
 0x955   :  { %v1404_v25 = vpop.f32.mrb[25].mxu1  ;;  %v3681_v12 = vadd.f32 %v2326_v19, %v2016_v40  ;;  %v1914_v19 = vld [vmem:[#allocation26 + $0x8] sm:$0xff] }
 0x956   :  { %v3679_v28 = vadd.f32 %v2016_v40, %v1404_v25  ;;  %v2327_v33 = vpop.f32.mrb[26].mxu1  ;;  %v1916_v25 = vmax.f32 %v1914_v19, 1.0 }
 0x957   :  { %v3683_v47 = vadd.f32 %v2327_v33, %v2016_v40  ;;  %v1407_v51 = vpop.f32.mrb[27].mxu1  ;;  %v1432_v24 = vmax.f32 %v3681_v12, 0.0  ;;  %v2474_v33 = vld [vmem:[#allocation19] sm:$0xff]  }
 0x958   :  { %v3685_v56 = vadd.f32 %v2016_v40, %v1407_v51  ;;  %v1430_v46 = vmax.f32 %v3679_v28, 0.0  ;;  %v1915_v40 = vmax.f32 %v1913_v29, 1.0  ;;  %v2475_v51 = vld [vmem:[#allocation19 + $0x8] sm:$0xff]   ;;  %2364 = vmatprep.subr.bf16.mxu1 %v2474_v33 }
 0x959   :  { %v1433_v53 = vmax.f32 %v3683_v47, 0.0  ;;  %2365 = vmatpush3.bf16.msra.mxu1 %v2474_v33 }
 0x95a   :  { %v1431_v58 = vmax.f32 %v3685_v56, 0.0  ;;  %2366 = vmatprep.subr.bf16.mxu1 %v2475_v51 }
 0x95b   :  { %v1435_v38 = vpack.c.bf16 %v1433_v53, %v1432_v24 }
 0x95c   :  { %v1434_v27 = vpack.c.bf16 %v1431_v58, %v1430_v46 }
 0x95d   :  { %2367 = vmatpush3.bf16.msra.mxu1 %v2475_v51 }
 0x95e   :  { %2344 = vmatprep.mubr.bf16.mxu0 %v1434_v27  ;;  %2348 = vmatprep.subr.bf16.mxu0 %v1434_v27 }
 0x95f   :  { %2345 = vmatmul.mubr.bf16.vlgmr.msra.gmra.mrb[28].mxu0 %v1435_v38 }
 0x960   :  { %2349 = vmatpush3.bf16.xpose.msra.mxu0 %v1434_v27 }
 0x961   :  { %2350 = vmatprep.subr.bf16.mxu0 %v1435_v38 }
 0x968   :  { %2351 = vmatpush3.bf16.xpose.msra.mxu0 %v1435_v38 }
 0x969   :  { %2356 = vmatprep.subr.bf16.mxu0 %v1434_v27 }
 0xa32   :  { %v2346_v32 = vpop.f32.mrb[28].mxu0 }
 0xa33   :  { %v1534_v35 = vpop.f32.mrb[29].mxu0 }
 0xa34   :  { %v2347_v42 = vpop.f32.mrb[30].mxu0 }
 0xa35   :  { %v1550_v36 = vpack.c.bf16 %v2347_v42, %v2346_v32  ;;  %v1537_v39 = vpop.f32.mrb[31].mxu0 }
 0xa36   :  { %v1549_v20 = vpack.c.bf16 %v1537_v39, %v1534_v35 }
 0xa38   :  { %2352 = vmatprep.mubr.bf16.mxu0 %v1549_v20 }
 0xa39   :  { %2353 = vmatmul.mubr.bf16.vlgmr.msra.gmra.mrb[32].mxu0 %v1550_v36 }
 0xa3a   :  { %2357 = vmatpush3.bf16.msra.mxu0 %v1434_v27  ;;  %v2476_v27 = vld [vmem:[#allocation19 + $0x10] sm:$0xff]  }
 0xa3b   :  { %2358 = vmatprep.subr.bf16.mxu0 %v1435_v38  ;;  %2368 = vmatprep.subr.bf16.mxu1 %v2476_v27 }
 0xa3c   :  { %2369 = vmatpush3.bf16.msra.mxu1 %v2476_v27 }
 0xa3e   :  { %2359 = vmatpush3.bf16.msra.mxu0 %v1435_v38  ;;  %v2477_v38 = vld [vmem:[#allocation19 + $0x18] sm:$0xff]  }
 0xa3f   :  { %2370 = vmatprep.subr.bf16.mxu1 %v2477_v38 }
 0xa40   :  { %2371 = vmatpush3.bf16.msra.mxu1 %v2477_v38 }
 0xa41   :  { %2372 = vmatprep.subr.bf16.mxu1 %v2478_v37 }
 0xa44   :  { %2373 = vmatpush3.bf16.msra.mxu1 %v2478_v37 }
 0xa45   :  { %2374 = vmatprep.subr.bf16.mxu1 %v2479_v43 }
 0xa48   :  { %2375 = vmatpush3.bf16.msra.mxu1 %v2479_v43 }
 0xa49   :  { %2376 = vmatprep.subr.bf16.mxu1 %v2480_v22 }
 0xa4c   :  { %2377 = vmatpush3.bf16.msra.mxu1 %v2480_v22 }
 0xa4d   :  { %2378 = vmatprep.subr.bf16.mxu1 %v2481_v50 }
 0xa50   :  { %2379 = vmatpush3.bf16.msra.mxu1 %v2481_v50 }
 0xb0c   :  { %v2354_v49 = vpop.f32.mrb[32].mxu0 }
 0xb0d   :  { %v1585_v63 = vpop.f32.mrb[33].mxu0  ;;  %v1627_v31 = vsel %vm1623_vm13, %v2354_v49, -1e+30 }
 0xb0e   :  { %v1625_v8 = vsel %vm1621_vm12, %v1585_v63, -1e+30  ;;  %v2355_v16 = vpop.f32.mrb[34].mxu0  ;;  %v1635_v44 = vsel %vm584_vm11, %v1627_v31, -inf }
 0xb0f   :  { %v1588_v17 = vpop.f32.mrb[35].mxu0  ;;  %v1629_v18 = vsel %vm584_vm11, %v1625_v8, -inf  ;;  %v1628_v4 = vsel %vm1624_vm15, %v2355_v16, -1e+30 }
 0xb10   :  { %v1626_v23 = vsel %vm1622_vm14, %v1588_v17, -1e+30  ;;  %1630 = vmax.xlane.f32.xlu0 %v1629_v18  ;;  %v1638_v41 = vsel %vm584_vm11, %v1628_v4, -inf }
 0xb11   :  { %v1632_v3 = vsel %vm584_vm11, %v1626_v23, -inf }
 0xb12   :  { %1633 = vmax.xlane.f32.xlu1 %v1632_v3  ;;  %v2918_v3 = vmov 0.0  }
 0xb13   :  { %2384 = vmatprep.subr.bf16.mxu0 %v2918_v3 }
 0xb14   :  { %1636 = vmax.xlane.f32.xlu0 %v1635_v44  ;;  %v2028_v44 = vld [vmem:[#allocation20] ss:$0 sm:$0xff] }
 0xb18   :  { %1639 = vmax.xlane.f32.xlu0 %v1638_v41 }
 0xb9d   :  { %v1631_v48 = vpop.xlane.xlu0 %1630 }
 0xb9e   :  { %v1641_v54 = vsub.f32 %v1625_v8, %v1631_v48 }
 0xb9f   :  { %v1634_v15 = vpop.xlane.xlu1 %1633 }
 0xba0   :  { %v1645_v5 = vmul.f32 1.442695, %v1641_v54  ;;  %v1642_v14 = vsub.f32 %v1626_v23, %v1634_v15 }
 0xba1   :  { %v1637_v10 = vpop.xlane.xlu0 %1636 }
 0xba2   :  { %2483 = vpow2.f32 %v1645_v5  ;;  %v1647_v45 = vmul.f32 1.442695, %v1642_v14  ;;  %v1643_v55 = vsub.f32 %v1627_v31, %v1637_v10 }
 0xba4   :  { %2485 = vpow2.f32 %v1647_v45  ;;  %v1649_v57 = vmul.f32 1.442695, %v1643_v55 }
 0xba5   :  { %v1640_v60 = vpop.xlane.xlu0 %1639 }
 0xba6   :  { %2487 = vpow2.f32 %v1649_v57  ;;  %v1644_v61 = vsub.f32 %v1628_v4, %v1640_v60 }
 0xba8   :  { %v1651_v1 = vmul.f32 1.442695, %v1644_v61 }
 0xbaa   :  { %2489 = vpow2.f32 %v1651_v1 }
 0xbac   :  { %v2484_v2 = vpop.eup %2483 }
 0xbad   :  { %v1653_v6 = vsel %vm584_vm11, %v2484_v2, 0.0 }
 0xbae   :  { %v2486_v7 = vpop.eup %2485  ;;  %1654 = vadd.xlane.f32.xlu1 %v1653_v6 }
 0xbaf   :  { %v1656_v26 = vsel %vm584_vm11, %v2486_v7, 0.0 }
 0xbb0   :  { %v2488_v9 = vpop.eup %2487  ;;  %1657 = vadd.xlane.f32.xlu0 %v1656_v26 }
 0xbb1   :  { %v1659_v11 = vsel %vm584_vm11, %v2488_v9, 0.0 }
 0xbb2   :  { %1660 = vadd.xlane.f32.xlu1 %v1659_v11 }
 0xbb4   :  { %v2490_v13 = vpop.eup %2489 }
 0xbb5   :  { %v1662_v59 = vsel %vm584_vm11, %v2490_v13, 0.0 }
 0xbb6   :  { %1663 = vadd.xlane.f32.xlu0 %v1662_v59 }
 0xbc3   :  { %1919 = vperm.xlu1 %2421, %v1915_v40  }
 0xbcc   :  { %1924 = vperm.xlu0 %2420, %v1916_v25  }
 0xc3b   :  { %v1655_v30 = vpop.xlane.xlu1 %1654 }
 0xc3c   :  { %2491 = vrcp.f32 %v1655_v30 }
 0xc3d   :  { %v1658_v34 = vpop.xlane.xlu0 %1657 }
 0xc3e   :  { %2493 = vrcp.f32 %v1658_v34 }
 0xc3f   :  { %v1661_v32 = vpop.xlane.xlu1 %1660 }
 0xc40   :  { %2495 = vrcp.f32 %v1661_v32 }
 0xc43   :  { %v1664_v35 = vpop.xlane.xlu0 %1663  ;;  %v1920_v11 = vpop.permute.xlu1 %1919 }
 0xc44   :  { %2497 = vrcp.f32 %v1664_v35 }
 0xc45   :  { %2499 = vrcp.f32 %v1920_v11 }
 0xc46   :  { %v2492_v42 = vpop.eup %2491 }
 0xc47   :  { %v1669_v39 = vmul.f32 %v2492_v42, %v2484_v2 }
 0xc48   :  { %v2494_v36 = vpop.eup %2493 }
 0xc49   :  { %v1670_v20 = vmul.f32 %v2494_v36, %v2486_v7 }
 0xc4a   :  { %v2496_v52 = vpop.eup %2495 }
 0xc4b   :  { %v1673_v62 = vpack.c.bf16 %v1670_v20, %v1669_v39  ;;  %v1671_v21 = vmul.f32 %v2496_v52, %v2488_v9  ;;  %v2482_v9 = vld [vmem:[#allocation25] sm:$0xff]   ;;  %v1925_v12 = vpop.permute.xlu0 %1924 }
 0xc4c   :  { %2501 = vrcp.f32 %v1925_v12 }
 0xc4d   :  { %2360 = vmatprep.mubr.msk.bf16.mxu0 %vm584_vm11, %v1673_v62 }
 0xc4e   :  { %v2498_v0 = vpop.eup %2497 }
 0xc4f   :  { %v1672_v49 = vmul.f32 %v2498_v0, %v2490_v13  ;;  %v2500_v47 = vpop.eup %2499 }
 0xc51   :  { %v1674_v63 = vpack.c.bf16 %v1672_v49, %v1671_v21 }
 0xc53   :  { %2361 = vmatmul.mubr.msk.bf16.vlgmr.msra.gmra.mrb[36].mxu0 %vm584_vm11, %v1674_v63 }
 0xc54   :  { %2388 = vmatprep.mubr.msk.bf16.mxu0 %vm2919_vm0, %v2918_v3 }
 0xc56   :  { %v2502_v56 = vpop.eup %2501 }
 0xd26   :  { %v2362_v8 = vpop.f32.mrb[36].mxu0 }
 0xd27   :  { %v1715_v16 = vpop.f32.mrb[37].mxu0 }
 0xd28   :  { %v2363_v17 = vpop.f32.mrb[38].mxu0 }
 0xd29   :  { %v1731_v18 = vpack.c.bf16 %v2363_v17, %v2362_v8  ;;  %v1718_v31 = vpop.f32.mrb[39].mxu0 }
 0xd2a   :  { %v1730_v23 = vpack.c.bf16 %v1718_v31, %v1715_v16 }
 0xd2c   :  { %2380 = vmatprep.mubr.bf16.mxu1 %v1730_v23 }
 0xd2d   :  { %2381 = vmatmul.mubr.bf16.vlgmr.msra.gmra.mrb[28].mxu1 %v1731_v18 }
 0xe00   :  { %v2382_v4 = vpop.f32.mrb[28].mxu1 }
 0xe01   :  { %v1846_v41 = vadd.f32 %v2382_v4, %v2028_v44  ;;  %v1837_v48 = vpop.f32.mrb[29].mxu1 }
 0xe02   :  { %v1838_v54 = vadd.f32 %v2028_v44, %v1837_v48  ;;  %v2383_v15 = vpop.f32.mrb[30].mxu1 }
 0xe03   :  { %v1854_v5 = vmax.f32 %v1846_v41, 0.0  ;;  %v1849_v14 = vadd.f32 %v2383_v15, %v2028_v44  ;;  %v1840_v10 = vpop.f32.mrb[31].mxu1 }
 0xe04   :  { %v1852_v45 = vmax.f32 %v1838_v54, 0.0  ;;  %v1841_v55 = vadd.f32 %v2028_v44, %v1840_v10 }
 0xe05   :  { %v1855_v57 = vmax.f32 %v1849_v14, 0.0  ;;  %v1858_v61 = vadd.f32 %v1854_v5, %v1432_v24 }
 0xe06   :  { %v1853_v60 = vmax.f32 %v1841_v55, 0.0  ;;  %v1856_v2 = vadd.f32 %v1852_v45, %v1430_v46 }
 0xe07   :  { %v1859_v1 = vadd.f32 %v1855_v57, %v1433_v53 }
 0xe08   :  { %v1857_v6 = vadd.f32 %v1853_v60, %v1431_v58 }
 0xe09   :  { %v1861_v7 = vpack.c.bf16 %v1859_v1, %v1858_v61 }
 0xe0a   :  { %v1860_v26 = vpack.c.bf16 %v1857_v6, %v1856_v2 }
 0xe0c   :  { %2385 = vmatpush3.bf16.msra.mxu0 %v1860_v26 }
 0xe0d   :  { %2386 = vmatprep.subr.bf16.mxu0 %v2918_v3 }
 0xe10   :  { %2387 = vmatpush3.bf16.msra.mxu0 %v1861_v7 }
 0xe13   :  { %2389 = vmatmul.mubr.msk.bf16.vlgmr.msra.gmra.mrb[40].mxu0 %vm584_vm11, %v2482_v9 }
 0xee6   :  { %v1906_v53 = vpop.f32.mrb[40].mxu0 }
 0xee7   :  { %v1928_v28 = vmul.f32 %v2500_v47, %v1906_v53  ;;  %v2390_v46 = vpop.f32.mrb[41].mxu0 }
 0xee8   :  { %v1909_v58 = vpop.f32.mrb[42].mxu0 }
 0xee9   :  { %1931 = vst [vmem:[#allocation28] sm:$0xff] %v1928_v28  ;;  %v1930_v24 = vmul.f32 %v2502_v56, %v1909_v58  ;;  %v2391_v13 = vpop.f32.mrb[43].mxu0 }
 0xeeb   :  { %1932 = vst [vmem:[#allocation28 + $0x8] sm:$0xff] %v1930_v24 }
 0xeec   :  { %2866 = shalt.err (!%p2863_p6)
}
 0xeed   :  { %s2867_s21 = scalar_lea.hbm %s3749_s16, 256 }
 0xeee   :  { %p2868_p7 = scmp.ne.s32.totalorder %s3749_s16, %s2867_s21  ;;  %p2871_p8 = scmp.lt.u32.totalorder %s2867_s21, %s3749_s16 }
 0xef0   :  { %p2873_p9 = pnand %p2871_p8, %p2868_p7 }
 0xef2   :  { %2876 = shalt.err (!%p2873_p9)
}
 0xef3   :  { %1944 = dma.vmem_to_hbm [thread:$0]  %s1939_s19, 256, %s3749_s16, [#allocation4], %s2913_s10, %s2913_s10, %s2914_s6  }
 0xef4   :  { %2895 = dma.done.wait [#allocation4], 256  }
 0xef5   :  { %2896 = vsyncadd [#allocation4], 4294967040 }
 0xef6   :  { %1948 = vsyncpa [#allocation3], 1 }
 0xef7   :  { %1949 = vsyncpa [#allocation6], 1 }
 0xef8   :  { %1950 = vsyncpa [#allocation9], 1 }
 0xef9   :  { %1951 = vsyncpa [#allocation12], 1 }
 0xefa   :  { %1952 = vsyncpa [#allocation15], 1 }
 0xefb   :  { %1953 = vsyncpa [#allocation18], 1 }
 0xefc   :  { %1954 = vsyncpa [#allocation21], 1 }
 0xefd   :  { %1955 = vsyncpa [#allocation24], 1 }
 0xefe   :  { %1956 = vsyncpa [#allocation27], 1 }
 0xeff   :  { %1957 = vsyncpa [#allocation4], 1 }

</bundles_post_ra>
